<compile_context>
chip_gen: v6e
topology: v6e:2x2x1
jax: 0.10.0
libtpu: 0.0.40
codegen_flags: <defaults>
</compile_context>

<pallas_src>
import jax
import jax.numpy as jnp
from jax.experimental import pallas as pl
from jax.experimental.pallas import tpu as pltpu

NEG_BIG = 1e30  # additive stand-in for masked_fill(-inf).  Only observable difference vs.
                # the reference: an image with ZERO valid descriptors yields pooled == 0
                # (ReLU of ~-1e30+b1) instead of -inf / NaN logits.


def local_feature_kernel(flags_ref, feat_ref, mask_ref, w1_ref, b1_ref,
                         pooled_ref, acc_ref):
    # grid = (B_pad // TB, N_pad // TN); batch axis "parallel", descriptor axis "arbitrary".
    b = pl.program_id(0)
    n = pl.program_id(1)
    num_n = pl.num_programs(1)

    @pl.when(n == 0)
    def _init():
        acc_ref[...] = jnp.full(acc_ref.shape, -jnp.inf, acc_ref.dtype)

    tb, tn, d = feat_ref.shape
    h_dim = w1_ref.shape[1]

    # Projector matmul only (b1 + ReLU deferred to finalize): one flattened
    # (TB*TN, 128) @ (128, 512) MXU matmul, bf16 inputs / f32 accumulation.
    # The bf16 cast is a no-op when the wrapper already supplied bf16.
    feat = feat_ref[...].reshape(tb * tn, d).astype(jnp.bfloat16)
    s = jnp.dot(feat, w1_ref[...], preferred_element_type=jnp.float32)
    s = s.reshape(tb, tn, h_dim)

    # Scalar-prefetched flag: 1 iff this (batch-tile, n-tile) contains any invalid rows.
    flag = flags_ref[b * num_n + n]

    @pl.when(flag != 0)
    def _ragged_tile():
        # additive mask (0 = valid descriptor, -1e30 = padding) then online max.
        masked = s + mask_ref[...][:, :, None]
        acc_ref[...] = jnp.maximum(acc_ref[...], jnp.max(masked, axis=1))

    @pl.when(flag == 0)
    def _dense_tile():
        # fully-valid tile: skip the mask broadcast-add (and its relayout) entirely.
        acc_ref[...] = jnp.maximum(acc_ref[...], jnp.max(s, axis=1))

    @pl.when(n == num_n - 1)
    def _finalize():
        # deferred bias + ReLU, once per batch tile (exact by monotonicity of max).
        pooled_ref[...] = jnp.maximum(acc_ref[...] + b1_ref[...], 0.0)


def local_feature_forward(features, mask, w1, b1, w2, b2):
    """features: (B, N, D) f32; mask: (B, N) bool. Returns (logits (B,C), pooled (B,H))."""
    B, N, D = features.shape
    H = w1.shape[1]

    # --- Tiling: TB=8 sublane-aligned batch tile, up to 256 descriptors per grid step.
    #     Per-step VMEM: feat tile <=1 MiB (x2 buffers) + s temp (TB*TN,512) f32 = 4 MiB
    #     + mask/weights/acc -> ~8-12 MiB, inside v5e's 16 MiB default and v7x's 32 MiB
    #     scoped VMEM (64 MiB physical).  vmem_limit_bytes set explicitly for headroom.
    TB = 8
    N16 = ((N + 15) // 16) * 16            # bf16-packed sublane multiple -> clean reshapes
    TN = min(256, N16)
    N_pad = ((N16 + TN - 1) // TN) * TN
    B_pad = ((B + TB - 1) // TB) * TB
    grid_b, grid_n = B_pad // TB, N_pad // TN

    # --- Additive mask bias: 0 valid / -1e30 invalid (batch/N padding rows are invalid).
    mask_add = jnp.where(mask, 0.0, -NEG_BIG).astype(jnp.float32)
    mask_add = jnp.pad(mask_add, ((0, B_pad - B), (0, N_pad - N)),
                       constant_values=-NEG_BIG)

    # --- Per-(batch-tile, n-tile) "has invalid rows" flags, scalar-prefetched into SMEM.
    mask_p = jnp.pad(mask, ((0, B_pad - B), (0, N_pad - N)), constant_values=False)
    all_valid = jnp.all(mask_p.reshape(grid_b, TB, grid_n, TN), axis=(1, 3))
    flags = jnp.logical_not(all_valid).reshape(-1).astype(jnp.int32)

    # --- Features: if already tile-aligned, pass raw f32 (cast to bf16 in-kernel) -> one
    #     HBM read, no prep pass; otherwise one fused pad+cast-to-bf16 pass.
    if B_pad == B and N_pad == N:
        feat_p = features
    else:
        feat_p = jnp.pad(features, ((0, B_pad - B), (0, N_pad - N), (0, 0))
                         ).astype(jnp.bfloat16)

    w1_b = w1.astype(jnp.bfloat16)
    b1_2d = b1.reshape(1, H).astype(jnp.float32)

    pooled_p = pl.pallas_call(
        local_feature_kernel,
        out_shape=jax.ShapeDtypeStruct((B_pad, H), jnp.float32),
        grid_spec=pltpu.PrefetchScalarGridSpec(
            num_scalar_prefetch=1,
            grid=(grid_b, grid_n),
            in_specs=[
                pl.BlockSpec((TB, TN, D), lambda b, n, flags: (b, n, 0)),   # descriptors
                pl.BlockSpec((TB, TN), lambda b, n, flags: (b, n)),         # additive mask
                pl.BlockSpec((D, H), lambda b, n, flags: (0, 0)),           # W1 (resident)
                pl.BlockSpec((1, H), lambda b, n, flags: (0, 0)),           # b1 (resident)
            ],
            out_specs=pl.BlockSpec((TB, H), lambda b, n, flags: (b, 0)),    # pooled (lane-dense)
            scratch_shapes=[pltpu.VMEM((TB, H), jnp.float32)],              # running max
        ),
        compiler_params=pltpu.CompilerParams(
            dimension_semantics=("parallel", "arbitrary"),
            vmem_limit_bytes=32 * 1024 * 1024),
    )(flags, feat_p, mask_add, w1_b, b1_2d)

    pooled = pooled_p[:B, :]
    # Tiny classifier outside the kernel: (B,512)@(512,C) in f32, applied only to real rows.
    logits = jnp.dot(pooled, w2, preferred_element_type=jnp.float32) + b2
    return logits, pooled


def reference_forward(features, mask, w1, b1, w2, b2):
    # Pure-JAX mirror of encode_features_learnable + classifier, using the same
    # bf16-input / f32-accumulate projector precision policy as the kernel.
    h = jnp.einsum("bnd,dh->bnh",
                   features.astype(jnp.bfloat16), w1.astype(jnp.bfloat16),
                   preferred_element_type=jnp.float32) + b1
    h = jnp.maximum(h, 0.0)
    h = jnp.where(mask[..., None], h, -jnp.inf)
    pooled = jnp.max(h, axis=1)
    logits = jnp.dot(pooled, w2, preferred_element_type=jnp.float32) + b2
    return logits, pooled


def make_case(key, B, N, D, H, C, n_valid):
    # TODO(synk): OpenCV SIFT/ORB descriptor extraction (extract_features_batch) has no
    # Pallas/TPU equivalent; synthetic descriptors stand in for detectAndCompute output.
    k_feat, k_w1, k_b1, k_w2, k_b2 = jax.random.split(key, 5)
    features = jax.random.normal(k_feat, (B, N, D), dtype=jnp.float32)
    mask = jnp.arange(N)[None, :] < n_valid[:, None]                 # (B, N) bool
    features = features * mask[..., None].astype(jnp.float32)        # zero padded rows
    # Deterministic parameter init (PyTorch nn.Linear-style uniform bounds).
    lim1 = 1.0 / jnp.sqrt(jnp.float32(D))
    lim2 = 1.0 / jnp.sqrt(jnp.float32(H))
    w1 = jax.random.uniform(k_w1, (D, H), jnp.float32, -lim1, lim1)
    b1 = jax.random.uniform(k_b1, (H,), jnp.float32, -lim1, lim1)
    w2 = jax.random.uniform(k_w2, (H, C), jnp.float32, -lim2, lim2)
    b2 = jax.random.uniform(k_b2, (C,), jnp.float32, -lim2, lim2)
    return features, mask, w1, b1, w2, b2


def check_case(args, atol=1e-3, rtol=1e-3):
    features, mask, w1, b1, w2, b2 = args
    logits, encoded = jax.jit(local_feature_forward)(features, mask, w1, b1, w2, b2)
    jax.block_until_ready((logits, encoded))
    ref_logits, ref_encoded = reference_forward(features, mask, w1, b1, w2, b2)
    assert encoded.shape == ref_encoded.shape and logits.shape == ref_logits.shape
    assert jnp.allclose(encoded, ref_encoded, atol=atol, rtol=rtol), \
        float(jnp.max(jnp.abs(encoded - ref_encoded)))
    assert jnp.allclose(logits, ref_logits, atol=atol, rtol=rtol), \
        float(jnp.max(jnp.abs(logits - ref_logits)))


if __name__ == "__main__":
    # Shapes implied by the module: feature_dim=128 (SIFT), projector hidden=512.
    D, H, C = 128, 512, 16
    key = jax.random.PRNGKey(0)
    k1, k2 = jax.random.split(key)

    # Case 1: small, ragged + padded shapes (B=2, N=8) -> pad+bf16 path, ragged-tile path.
    check_case(make_case(k1, 2, 8, D, H, C,
                         n_valid=jnp.array([8, 5], dtype=jnp.int32)))

    # Case 2: tile-aligned shapes (B=8, N=512) -> raw-f32 path, multiple N tiles,
    # exercising both the fully-valid (dense) and ragged tile branches.
    check_case(make_case(k2, 8, 512, D, H, C,
                         n_valid=jnp.array([512, 256, 300, 256, 257, 384, 256, 512],
                                           dtype=jnp.int32)))

    print("KERNEL_OK")
</pallas_src>

<mosaic_0001>
module attributes {stable_mosaic.version = 11 : i64} {
  func.func @local_feature_kernel(%arg0: i32, %arg1: i32, %arg2: memref<1xi32, #tpu.memory_space<smem>>, %arg3: memref<8x16x128xbf16, #tpu.memory_space<vmem>>, %arg4: memref<8x16xf32, #tpu.memory_space<vmem>>, %arg5: memref<128x512xbf16, #tpu.memory_space<vmem>>, %arg6: memref<1x512xf32, #tpu.memory_space<vmem>>, %arg7: memref<8x512xf32, #tpu.memory_space<vmem>>, %arg8: memref<8x512xf32, #tpu.memory_space<vmem>>) attributes {dimension_semantics = [#tpu.dimension_semantics<parallel>, #tpu.dimension_semantics<arbitrary>], iteration_bounds = array<i64: 1, 1>, scalar_prefetch = 1 : i64, scratch_operands = 1 : i64, tpu.core_type = #tpu.core_type<tc>, window_params = [{transform_indices = @transform_0, window_bounds = array<i64: 8, 16, 128>}, {transform_indices = @transform_1, window_bounds = array<i64: 8, 16>}, {pipeline_mode = #tpu.pipeline_mode<synchronous>, transform_indices = @transform_2, window_bounds = array<i64: 128, 512>}, {pipeline_mode = #tpu.pipeline_mode<synchronous>, transform_indices = @transform_3, window_bounds = array<i64: 1, 512>}, {transform_indices = @transform_4, window_bounds = array<i64: 8, 512>}]} {
    %c0_i32 = arith.constant 0 : i32
    %0 = arith.cmpi eq, %arg1, %c0_i32 : i32
    %1 = arith.extui %0 : i1 to i32
    %c0_i32_0 = arith.constant 0 : i32
    %2 = arith.cmpi ne, %1, %c0_i32_0 : i32
    scf.if %2 {
      %cst_11 = arith.constant 0xFF800000 : f32
      %21 = vector.broadcast %cst_11 : f32 to vector<8x512xf32>
      %c0_12 = arith.constant 0 : index
      %c0_13 = arith.constant 0 : index
      %22 = vector.load %arg8[%c0_12, %c0_13] : memref<8x512xf32, #tpu.memory_space<vmem>>, vector<8x512xf32>
      tpu.vector_store %arg8[%c0_12, %c0_13], %21 {strides = array<i32>} : memref<8x512xf32, #tpu.memory_space<vmem>>, vector<8x512xf32>,
    } else {
    }
    %c0 = arith.constant 0 : index
    %c0_1 = arith.constant 0 : index
    %c0_2 = arith.constant 0 : index
    %3 = vector.load %arg3[%c0, %c0_1, %c0_2] : memref<8x16x128xbf16, #tpu.memory_space<vmem>>, vector<8x16x128xbf16>
    %4 = vector.shape_cast %3 : vector<8x16x128xbf16> to vector<128x128xbf16>
    %c0_3 = arith.constant 0 : index
    %c0_4 = arith.constant 0 : index
    %5 = vector.load %arg5[%c0_3, %c0_4] : memref<128x512xbf16, #tpu.memory_space<vmem>>, vector<128x512xbf16>
    %cst = arith.constant dense<0.000000e+00> : vector<128x512xf32>
    %6 = tpu.matmul %4, %5, %cst {dimension_numbers = #tpu.dot_dimension_numbers<[1], [0], [0], [1], [0, 0, 1, 1], [], []>} : vector<128x128xbf16>, vector<128x512xbf16>, vector<128x512xf32> -> vector<128x512xf32>
    %7 = vector.shape_cast %6 : vector<128x512xf32> to vector<8x16x512xf32>
    %c1_i32 = arith.constant 1 : i32
    %8 = arith.muli %arg0, %c1_i32 : i32
    %9 = arith.addi %8, %arg1 : i32
    %10 = arith.index_cast %9 : i32 to index
    %11 = memref.load %arg2[%10] : memref<1xi32, #tpu.memory_space<smem>>
    %c0_i32_5 = arith.constant 0 : i32
    %12 = arith.cmpi ne, %11, %c0_i32_5 : i32
    %13 = arith.extui %12 : i1 to i32
    %c0_i32_6 = arith.constant 0 : i32
    %14 = arith.cmpi ne, %13, %c0_i32_6 : i32
    scf.if %14 {
      %c0_11 = arith.constant 0 : index
      %c0_12 = arith.constant 0 : index
      %21 = vector.load %arg4[%c0_11, %c0_12] : memref<8x16xf32, #tpu.memory_space<vmem>>, vector<8x16xf32>
      %22 = vector.shape_cast %21 : vector<8x16xf32> to vector<8x16x1xf32>
      %23 = vector.broadcast %22 : vector<8x16x1xf32> to vector<8x16x512xf32>
      %24 = arith.addf %7, %23 : vector<8x16x512xf32>
      %c0_13 = arith.constant 0 : index
      %c0_14 = arith.constant 0 : index
      %25 = vector.load %arg8[%c0_13, %c0_14] : memref<8x512xf32, #tpu.memory_space<vmem>>, vector<8x512xf32>
      %cst_15 = arith.constant dense<0xFF800000> : vector<8x512xf32>
      %26 = vector.multi_reduction <maximumf>, %24, %cst_15 [1] : vector<8x16x512xf32> to vector<8x512xf32>
      %27 = arith.maximumf %25, %26 : vector<8x512xf32>
      %c0_16 = arith.constant 0 : index
      %c0_17 = arith.constant 0 : index
      %28 = vector.load %arg8[%c0_16, %c0_17] : memref<8x512xf32, #tpu.memory_space<vmem>>, vector<8x512xf32>
      tpu.vector_store %arg8[%c0_16, %c0_17], %27 {strides = array<i32>} : memref<8x512xf32, #tpu.memory_space<vmem>>, vector<8x512xf32>,
    } else {
    }
    %c0_i32_7 = arith.constant 0 : i32
    %15 = arith.cmpi eq, %11, %c0_i32_7 : i32
    %16 = arith.extui %15 : i1 to i32
    %c0_i32_8 = arith.constant 0 : i32
    %17 = arith.cmpi ne, %16, %c0_i32_8 : i32
    scf.if %17 {
      %c0_11 = arith.constant 0 : index
      %c0_12 = arith.constant 0 : index
      %21 = vector.load %arg8[%c0_11, %c0_12] : memref<8x512xf32, #tpu.memory_space<vmem>>, vector<8x512xf32>
      %cst_13 = arith.constant dense<0xFF800000> : vector<8x512xf32>
      %22 = vector.multi_reduction <maximumf>, %7, %cst_13 [1] : vector<8x16x512xf32> to vector<8x512xf32>
      %23 = arith.maximumf %21, %22 : vector<8x512xf32>
      %c0_14 = arith.constant 0 : index
      %c0_15 = arith.constant 0 : index
      %24 = vector.load %arg8[%c0_14, %c0_15] : memref<8x512xf32, #tpu.memory_space<vmem>>, vector<8x512xf32>
      tpu.vector_store %arg8[%c0_14, %c0_15], %23 {strides = array<i32>} : memref<8x512xf32, #tpu.memory_space<vmem>>, vector<8x512xf32>,
    } else {
    }
    %c0_i32_9 = arith.constant 0 : i32
    %18 = arith.cmpi eq, %arg1, %c0_i32_9 : i32
    %19 = arith.extui %18 : i1 to i32
    %c0_i32_10 = arith.constant 0 : i32
    %20 = arith.cmpi ne, %19, %c0_i32_10 : i32
    scf.if %20 {
      %c0_11 = arith.constant 0 : index
      %c0_12 = arith.constant 0 : index
      %21 = vector.load %arg8[%c0_11, %c0_12] : memref<8x512xf32, #tpu.memory_space<vmem>>, vector<8x512xf32>
      %c0_13 = arith.constant 0 : index
      %c0_14 = arith.constant 0 : index
      %22 = vector.load %arg6[%c0_13, %c0_14] : memref<1x512xf32, #tpu.memory_space<vmem>>, vector<1x512xf32>
      %23 = vector.broadcast %22 : vector<1x512xf32> to vector<8x512xf32>
      %24 = arith.addf %21, %23 : vector<8x512xf32>
      %cst_15 = arith.constant 0.000000e+00 : f32
      %25 = vector.broadcast %cst_15 : f32 to vector<8x512xf32>
      %26 = arith.maximumf %24, %25 : vector<8x512xf32>
      %c0_16 = arith.constant 0 : index
      %c0_17 = arith.constant 0 : index
      %27 = vector.load %arg7[%c0_16, %c0_17] : memref<8x512xf32, #tpu.memory_space<vmem>>, vector<8x512xf32>
      tpu.vector_store %arg7[%c0_16, %c0_17], %26 {strides = array<i32>} : memref<8x512xf32, #tpu.memory_space<vmem>>, vector<8x512xf32>,
    } else {
    }
    return
  }
  func.func @transform_0(%arg0: i32, %arg1: i32, %arg2: memref<1xi32, #tpu.memory_space<smem>>) -> (i32, i32, i32) {
    %c0_i32 = arith.constant 0 : i32
    %c0_i32_0 = arith.constant 0 : i32
    return %arg0, %arg1, %c0_i32 : i32, i32, i32
  }
  func.func @transform_1(%arg0: i32, %arg1: i32, %arg2: memref<1xi32, #tpu.memory_space<smem>>) -> (i32, i32) {
    %c0_i32 = arith.constant 0 : i32
    return %arg0, %arg1 : i32, i32
  }
  func.func @transform_2(%arg0: i32, %arg1: i32, %arg2: memref<1xi32, #tpu.memory_space<smem>>) -> (i32, i32) {
    %c0_i32 = arith.constant 0 : i32
    %c0_i32_0 = arith.constant 0 : i32
    %c0_i32_1 = arith.constant 0 : i32
    return %c0_i32, %c0_i32_0 : i32, i32
  }
  func.func @transform_3(%arg0: i32, %arg1: i32, %arg2: memref<1xi32, #tpu.memory_space<smem>>) -> (i32, i32) {
    %c0_i32 = arith.constant 0 : i32
    %c0_i32_0 = arith.constant 0 : i32
    %c0_i32_1 = arith.constant 0 : i32
    return %c0_i32, %c0_i32_0 : i32, i32
  }
  func.func @transform_4(%arg0: i32, %arg1: i32, %arg2: memref<1xi32, #tpu.memory_space<smem>>) -> (i32, i32) {
    %c0_i32 = arith.constant 0 : i32
    %c0_i32_0 = arith.constant 0 : i32
    return %arg0, %c0_i32 : i32, i32
  }
}

</mosaic_0001>

<bundles_post_ra>
// kernel: local_feature_forward.1
= control target key start
LH: loop header
LB: loop body
LE: loop exit
PB: predicated region body
PF: predicated region fallthrough
CT: control target
= control target key end

     0   :  { %v1432_v0 = vmov -inf   ;;  %v1433_v2 = vmov 0   ;;  %s2072_s0 = inlined_call_operand.<no memory space> [shape: s32[1], index: 0, kind: input, shape index: {}]   ;;  %s2073_s2 = inlined_call_operand.vmem [shape: f32[8,16], index: 2, kind: input, shape index: {}]   ;;  %s2074_s3 = inlined_call_operand.vmem [shape: bf16[128,512], index: 3, kind: input, shape index: {}]   ;;  %s2075_s4 = inlined_call_operand.vmem [shape: f32[1,512], index: 4, kind: input, shape index: {}]   ;;  %s2076_s5 = inlined_call_operand.vmem [shape: f32[8,512], index: 5, kind: output, shape index: {}]   ;;  %s2077_s1 = inlined_call_operand.vmem [shape: bf16[8,16,128], index: 1, kind: input, shape index: {}]  }
   0x1   :  { %24 = vst [vmem:[#allocation2 + $0x10] sm:$0xff] %v1432_v0  ;;  %25 = vst [vmem:[#allocation2] sm:$0xff] %v1432_v0  ;;  %v1376_v1 = vld [vmem:[%s2074_s3 + $0xe4] ss:$16 sps:$4 sm:$0xff]   ;;  %316 = vmatprep.mubr.bf16.mxu0 %v1433_v2  ;;  %429 = vmatprep.mubr.bf16.mxu1 %v1433_v2  ;;  %v1378_v3 = vld [vmem:[%s2074_s3 + $0xec] ss:$16 sps:$4 sm:$0xff]  }
   0x2   :  { %26 = vst [vmem:[#allocation2 + $0x18] sm:$0xff] %v1432_v0  ;;  %27 = vst [vmem:[#allocation2 + $0x8] sm:$0xff] %v1432_v0  ;;  %284 = vmatprep.subr.bf16.mxu0 %v1376_v1  ;;  %v1380_v4 = vld [vmem:[%s2074_s3 + $0xe0] ss:$16 sps:$4 sm:$0xff]   ;;  %v1381_v5 = vld [vmem:[%s2074_s3 + $0xe8] ss:$16 sps:$4 sm:$0xff]   ;;  %397 = vmatprep.subr.bf16.mxu1 %v1378_v3 }
   0x3   :  { %v1382_v6 = vld [vmem:[%s2074_s3 + $0xc4] ss:$16 sps:$4 sm:$0xff]   ;;  %285 = vmatpush1.bf16.msra.mxu0 %v1380_v4  ;;  %398 = vmatpush1.bf16.msra.mxu1 %v1381_v5  ;;  %v1384_v7 = vld [vmem:[%s2074_s3 + $0xcc] ss:$16 sps:$4 sm:$0xff]   ;;  %v1386_v8 = vld [vmem:[%s2074_s3 + $0xc0] ss:$16 sps:$4 sm:$0xff]  }
   0x4   :  { %286 = vmatprep.subr.bf16.mxu0 %v1382_v6  ;;  %v1387_v9 = vld [vmem:[%s2074_s3 + $0xc8] ss:$16 sps:$4 sm:$0xff]   ;;  %399 = vmatprep.subr.bf16.mxu1 %v1384_v7  ;;  %v1388_v10 = vld [vmem:[%s2074_s3 + $0xa4] ss:$16 sps:$4 sm:$0xff]   ;;  %v1390_v11 = vld [vmem:[%s2074_s3 + $0xac] ss:$16 sps:$4 sm:$0xff]  }
   0x5   :  { %v1392_v12 = vld [vmem:[%s2074_s3 + $0xa0] ss:$16 sps:$4 sm:$0xff]   ;;  %v1393_v13 = vld [vmem:[%s2074_s3 + $0xa8] ss:$16 sps:$4 sm:$0xff]   ;;  %v1394_v14 = vld [vmem:[%s2074_s3 + $0x84] ss:$16 sps:$4 sm:$0xff]  }
   0x6   :  { %v1396_v15 = vld [vmem:[%s2074_s3 + $0x8c] ss:$16 sps:$4 sm:$0xff]   ;;  %v1398_v16 = vld [vmem:[%s2074_s3 + $0x80] ss:$16 sps:$4 sm:$0xff]   ;;  %v1399_v17 = vld [vmem:[%s2074_s3 + $0x88] ss:$16 sps:$4 sm:$0xff]  }
   0x7   :  { %287 = vmatpush1.bf16.msra.mxu0 %v1386_v8  ;;  %400 = vmatpush1.bf16.msra.mxu1 %v1387_v9  ;;  %v1400_v18 = vld [vmem:[%s2074_s3 + $0x64] ss:$16 sps:$4 sm:$0xff]   ;;  %v1402_v19 = vld [vmem:[%s2074_s3 + $0x6c] ss:$16 sps:$4 sm:$0xff]   ;;  %v1404_v20 = vld [vmem:[%s2074_s3 + $0x60] ss:$16 sps:$4 sm:$0xff]  }
   0x8   :  { %288 = vmatprep.subr.bf16.mxu0 %v1388_v10  ;;  %401 = vmatprep.subr.bf16.mxu1 %v1390_v11  ;;  %v1405_v21 = vld [vmem:[%s2074_s3 + $0x68] ss:$16 sps:$4 sm:$0xff]   ;;  %v1406_v22 = vld [vmem:[%s2074_s3 + $0x44] ss:$16 sps:$4 sm:$0xff]   ;;  %v1408_v23 = vld [vmem:[%s2074_s3 + $0x4c] ss:$16 sps:$4 sm:$0xff]  }
   0x9   :  { %v1410_v24 = vld [vmem:[%s2074_s3 + $0x40] ss:$16 sps:$4 sm:$0xff]   ;;  %v1411_v25 = vld [vmem:[%s2074_s3 + $0x48] ss:$16 sps:$4 sm:$0xff]   ;;  %v1412_v26 = vld [vmem:[%s2074_s3 + $0x24] ss:$16 sps:$4 sm:$0xff]  }
   0xa   :  { %v1414_v27 = vld [vmem:[%s2074_s3 + $0x2c] ss:$16 sps:$4 sm:$0xff]   ;;  %v1416_v28 = vld [vmem:[%s2074_s3 + $0x20] ss:$16 sps:$4 sm:$0xff]   ;;  %v1417_v29 = vld [vmem:[%s2074_s3 + $0x28] ss:$16 sps:$4 sm:$0xff]  }
   0xb   :  { %289 = vmatpush1.bf16.msra.mxu0 %v1392_v12  ;;  %402 = vmatpush1.bf16.msra.mxu1 %v1393_v13  ;;  %v1418_v30 = vld [vmem:[%s2074_s3 + $0x4] ss:$16 sps:$4 sm:$0xff]   ;;  %v1420_v31 = vld [vmem:[%s2074_s3 + $0xc] ss:$16 sps:$4 sm:$0xff]   ;;  %v1422_v32 = vld [vmem:[%s2074_s3] ss:$16 sps:$4 sm:$0xff]  }
   0xc   :  { %290 = vmatprep.subr.bf16.mxu0 %v1394_v14  ;;  %403 = vmatprep.subr.bf16.mxu1 %v1396_v15  ;;  %v1423_v33 = vld [vmem:[%s2074_s3 + $0x8] ss:$16 sps:$4 sm:$0xff]   ;;  %v1424_v34 = vld [vmem:[%s2077_s1] sm:$0xff]   ;;  %v1426_v36 = vld [vmem:[%s2077_s1 + $0x10] sm:$0xff]   ;;  %p1372_p0 = scmp.eq.s32.totalorder %s2072_s0, 0 }
   0xd   :  { %v1425_v35 = vld [vmem:[%s2077_s1 + $0x8] sm:$0xff]   ;;  %v1427_v37 = vld [vmem:[%s2077_s1 + $0x18] sm:$0xff]   ;;  %v1428_v38 = vld [vmem:[%s2077_s1 + $0x20] sm:$0xff]  }
   0xe   :  { %v1429_v39 = vld [vmem:[%s2077_s1 + $0x28] sm:$0xff]   ;;  %v1430_v40 = vld [vmem:[%s2077_s1 + $0x30] sm:$0xff]   ;;  %v1431_v41 = vld [vmem:[%s2077_s1 + $0x38] sm:$0xff]  }
   0xf   :  { %291 = vmatpush1.bf16.msra.mxu0 %v1398_v16  ;;  %404 = vmatpush1.bf16.msra.mxu1 %v1399_v17 }
  0x10   :  { %292 = vmatprep.subr.bf16.mxu0 %v1400_v18  ;;  %405 = vmatprep.subr.bf16.mxu1 %v1402_v19 }
  0x13   :  { %293 = vmatpush1.bf16.msra.mxu0 %v1404_v20  ;;  %406 = vmatpush1.bf16.msra.mxu1 %v1405_v21 }
  0x14   :  { %294 = vmatprep.subr.bf16.mxu0 %v1406_v22  ;;  %407 = vmatprep.subr.bf16.mxu1 %v1408_v23 }
  0x17   :  { %295 = vmatpush1.bf16.msra.mxu0 %v1410_v24  ;;  %408 = vmatpush1.bf16.msra.mxu1 %v1411_v25 }
  0x18   :  { %296 = vmatprep.subr.bf16.mxu0 %v1412_v26  ;;  %409 = vmatprep.subr.bf16.mxu1 %v1414_v27 }
  0x1b   :  { %297 = vmatpush1.bf16.msra.mxu0 %v1416_v28  ;;  %410 = vmatpush1.bf16.msra.mxu1 %v1417_v29 }
  0x1c   :  { %298 = vmatprep.subr.bf16.mxu0 %v1418_v30  ;;  %411 = vmatprep.subr.bf16.mxu1 %v1420_v31 }
  0x1f   :  { %299 = vmatpush1.bf16.msra.mxu0 %v1422_v32  ;;  %412 = vmatpush1.bf16.msra.mxu1 %v1423_v33 }
  0x22   :  { %317 = vmatmul.mubr.bf16.vlgmr.msra.gmra.mxu0 %v1424_v34  ;;  %430 = vmatmul.mubr.bf16.vlgmr.msra.gmra.mxu1 %v1424_v34 }
  0x23   :  { %326 = vmatprep.mubr.bf16.mxu0 %v1433_v2  ;;  %439 = vmatprep.mubr.bf16.mxu1 %v1433_v2 }
  0x2a   :  { %327 = vmatmul.mubr.bf16.gmra.mxu0 %v1425_v35  ;;  %440 = vmatmul.mubr.bf16.gmra.mxu1 %v1425_v35 }
  0x2b   :  { %336 = vmatprep.mubr.bf16.mxu0 %v1433_v2  ;;  %449 = vmatprep.mubr.bf16.mxu1 %v1433_v2 }
  0x32   :  { %337 = vmatmul.mubr.bf16.gmra.mxu0 %v1426_v36  ;;  %450 = vmatmul.mubr.bf16.gmra.mxu1 %v1426_v36 }
  0x33   :  { %346 = vmatprep.mubr.bf16.mxu0 %v1433_v2  ;;  %459 = vmatprep.mubr.bf16.mxu1 %v1433_v2 }
  0x3a   :  { %347 = vmatmul.mubr.bf16.gmra.mxu0 %v1427_v37  ;;  %460 = vmatmul.mubr.bf16.gmra.mxu1 %v1427_v37 }
  0x3b   :  { %356 = vmatprep.mubr.bf16.mxu0 %v1433_v2  ;;  %469 = vmatprep.mubr.bf16.mxu1 %v1433_v2 }
  0x42   :  { %357 = vmatmul.mubr.bf16.gmra.mxu0 %v1428_v38  ;;  %470 = vmatmul.mubr.bf16.gmra.mxu1 %v1428_v38 }
  0x43   :  { %366 = vmatprep.mubr.bf16.mxu0 %v1433_v2  ;;  %479 = vmatprep.mubr.bf16.mxu1 %v1433_v2 }
  0x4a   :  { %367 = vmatmul.mubr.bf16.gmra.mxu0 %v1429_v39  ;;  %480 = vmatmul.mubr.bf16.gmra.mxu1 %v1429_v39 }
  0x4b   :  { %376 = vmatprep.mubr.bf16.mxu0 %v1433_v2  ;;  %489 = vmatprep.mubr.bf16.mxu1 %v1433_v2 }
  0x52   :  { %377 = vmatmul.mubr.bf16.gmra.mxu0 %v1430_v40  ;;  %490 = vmatmul.mubr.bf16.gmra.mxu1 %v1430_v40 }
  0x53   :  { %386 = vmatprep.mubr.bf16.mxu0 %v1433_v2  ;;  %499 = vmatprep.mubr.bf16.mxu1 %v1433_v2 }
  0x5a   :  { %387 = vmatmul.mubr.bf16.gmra.mxu0 %v1431_v41  ;;  %500 = vmatmul.mubr.bf16.gmra.mxu1 %v1431_v41 }
  0xe2   :  { %v1600_v42 = vpop.f32.mrf.mxu0  ;;  %v1602_v43 = vpop.f32.mrf.mxu1 }
  0xe3   :  { %2101 = vst [vmem:[#allocation5_spill] sm:$0xff] %v1600_v42  ;;  %2102 = vst [vmem:[#allocation6_spill] sm:$0xff] %v1602_v43 }
  0xe4   :  { %v1604_v44 = vpop.f32.mrf.mxu0  ;;  %v1606_v45 = vpop.f32.mrf.mxu1 }
  0xe5   :  { %2103 = vst [vmem:[#allocation7_spill] sm:$0xff] %v1604_v44  ;;  %2104 = vst [vmem:[#allocation8_spill] sm:$0xff] %v1606_v45 }
  0xe6   :  { %v1608_v46 = vpop.f32.mrf.mxu0  ;;  %v1610_v47 = vpop.f32.mrf.mxu1 }
  0xe7   :  { %2105 = vst [vmem:[#allocation9_spill] sm:$0xff] %v1608_v46  ;;  %2106 = vst [vmem:[#allocation10_spill] sm:$0xff] %v1610_v47 }
  0xe8   :  { %v1612_v48 = vpop.f32.mrf.mxu0  ;;  %v1614_v49 = vpop.f32.mrf.mxu1 }
  0xe9   :  { %2107 = vst [vmem:[#allocation11_spill] sm:$0xff] %v1612_v48 }
  0xea   :  { %v1616_v50 = vpop.f32.mrf.mxu0  ;;  %v1618_v51 = vpop.f32.mrf.mxu1 }
  0xeb   :  { %2108 = vst [vmem:[#allocation12_spill] sm:$0xff] %v1616_v50  ;;  %2109 = vst [vmem:[#allocation13_spill] sm:$0xff] %v1618_v51 }
  0xec   :  { %v1620_v52 = vpop.f32.mrf.mxu0  ;;  %v1622_v53 = vpop.f32.mrf.mxu1 }
  0xed   :  { %2110 = vst [vmem:[#allocation14_spill] sm:$0xff] %v1620_v52  ;;  %2111 = vst [vmem:[#allocation15_spill] sm:$0xff] %v1622_v53 }
  0xee   :  { %v1624_v54 = vpop.f32.mrf.mxu0  ;;  %v1626_v55 = vpop.f32.mrf.mxu1 }
  0xef   :  { %2112 = vst [vmem:[#allocation16_spill] sm:$0xff] %v1624_v54  ;;  %2113 = vst [vmem:[#allocation17_spill] sm:$0xff] %v1626_v55 }
  0xf0   :  { %v1628_v56 = vpop.f32.mrf.mxu0  ;;  %v1630_v57 = vpop.f32.mrf.mxu1 }
  0xf1   :  { %2114 = vst [vmem:[#allocation18_spill] sm:$0xff] %v1628_v56  ;;  %2115 = vst [vmem:[#allocation19_spill] sm:$0xff] %v1630_v57 }
  0xf2   :  { %v1632_v58 = vpop.f32.mrf.mxu0  ;;  %v1634_v59 = vpop.f32.mrf.mxu1 }
  0xf4   :  { %v1636_v60 = vpop.f32.mrf.mxu0  ;;  %v1638_v61 = vpop.f32.mrf.mxu1 }
  0xf6   :  { %v1640_v62 = vpop.f32.mrf.mxu0  ;;  %v1642_v63 = vpop.f32.mrf.mxu1 }
  0xf8   :  { %v1644_v0 = vpop.f32.mrf.mxu0  ;;  %v1646_v1 = vpop.f32.mrf.mxu1 }
  0xfa   :  { %v1648_v2 = vpop.f32.mrf.mxu0  ;;  %v1650_v3 = vpop.f32.mrf.mxu1 }
  0xfb   :  { %2116 = vst [vmem:[#allocation20_spill] sm:$0xff] %v1648_v2  ;;  %2117 = vst [vmem:[#allocation21_spill] sm:$0xff] %v1650_v3 }
  0xfc   :  { %v1652_v4 = vpop.f32.mrf.mxu0  ;;  %v1654_v5 = vpop.f32.mrf.mxu1 }
  0xfd   :  { %2118 = vst [vmem:[#allocation22_spill] sm:$0xff] %v1652_v4  ;;  %2119 = vst [vmem:[#allocation23_spill] sm:$0xff] %v1654_v5 }
  0xfe   :  { %v1656_v6 = vpop.f32.mrf.mxu0  ;;  %v1658_v7 = vpop.f32.mrf.mxu1 }
  0xff   :  { %2120 = vst [vmem:[#allocation24_spill] sm:$0xff] %v1656_v6  ;;  %2121 = vst [vmem:[#allocation25_spill] sm:$0xff] %v1658_v7 }
 0x100   :  { %v1660_v8 = vpop.f32.mrf.mxu0  ;;  %v1662_v9 = vpop.f32.mrf.mxu1 }
 0x101   :  { %2122 = vst [vmem:[#allocation26_spill] sm:$0xff] %v1660_v8  ;;  %2123 = vst [vmem:[#allocation27_spill] sm:$0xff] %v1662_v9 }
 0x102   :  { %v1664_v10 = vpop.f32.mrf.mxu0  ;;  %v1666_v11 = vpop.f32.mrf.mxu1 }
 0x104   :  { %v1668_v12 = vpop.f32.mrf.mxu0  ;;  %v1670_v13 = vpop.f32.mrf.mxu1 }
 0x106   :  { %v1672_v14 = vpop.f32.mrf.mxu0  ;;  %v1674_v15 = vpop.f32.mrf.mxu1 }
 0x108   :  { %v1676_v16 = vpop.f32.mrf.mxu0  ;;  %v1678_v17 = vpop.f32.mrf.mxu1 }
 0x10a   :  { %v1680_v18 = vpop.f32.mrf.mxu0  ;;  %v1682_v19 = vpop.f32.mrf.mxu1 }
 0x10b   :  { %2124 = vst [vmem:[#allocation28_spill] sm:$0xff] %v1680_v18  ;;  %2125 = vst [vmem:[#allocation29_spill] sm:$0xff] %v1682_v19 }
 0x10c   :  { %v1684_v20 = vpop.f32.mrf.mxu0  ;;  %v1686_v21 = vpop.f32.mrf.mxu1 }
 0x10d   :  { %2126 = vst [vmem:[#allocation30_spill] sm:$0xff] %v1684_v20  ;;  %2127 = vst [vmem:[#allocation31_spill] sm:$0xff] %v1686_v21 }
 0x10e   :  { %v1688_v22 = vpop.f32.mrf.mxu0  ;;  %v1690_v23 = vpop.f32.mrf.mxu1 }
 0x110   :  { %v1692_v24 = vpop.f32.mrf.mxu0  ;;  %v1694_v25 = vpop.f32.mrf.mxu1 }
 0x111   :  { %2128 = vst [vmem:[#allocation32_spill] sm:$0xff] %v1694_v25 }
 0x112   :  { %v1696_v26 = vpop.f32.mrf.mxu0  ;;  %v1698_v27 = vpop.f32.mrf.mxu1 }
 0x113   :  { %2129 = vst [vmem:[#allocation33_spill] sm:$0xff] %v1696_v26  ;;  %2130 = vst [vmem:[#allocation34_spill] sm:$0xff] %v1698_v27 }
 0x114   :  { %v1700_v28 = vpop.f32.mrf.mxu0  ;;  %v1702_v29 = vpop.f32.mrf.mxu1 }
 0x115   :  { %2131 = vst [vmem:[#allocation35_spill] sm:$0xff] %v1700_v28  ;;  %2132 = vst [vmem:[#allocation36_spill] sm:$0xff] %v1702_v29 }
 0x116   :  { %v1704_v30 = vpop.f32.mrf.mxu0  ;;  %v1706_v31 = vpop.f32.mrf.mxu1 }
 0x117   :  { %2133 = vst [vmem:[#allocation37_spill] sm:$0xff] %v1704_v30  ;;  %2134 = vst [vmem:[#allocation38_spill] sm:$0xff] %v1706_v31 }
 0x118   :  { %v1708_v32 = vpop.f32.mrf.mxu0  ;;  %v1710_v33 = vpop.f32.mrf.mxu1 }
 0x119   :  { %2135 = vst [vmem:[#allocation39_spill] sm:$0xff] %v1708_v32  ;;  %2136 = vst [vmem:[#allocation40_spill] sm:$0xff] %v1710_v33 }
 0x11a   :  { %v1712_v34 = vpop.f32.mrf.mxu0  ;;  %v1714_v35 = vpop.f32.mrf.mxu1 }
 0x11b   :  { %2137 = vst [vmem:[#allocation41_spill] sm:$0xff] %v1712_v34  ;;  %2138 = vst [vmem:[#allocation42_spill] sm:$0xff] %v1714_v35 }
 0x11c   :  { %v1716_v36 = vpop.f32.mrf.mxu0  ;;  %v1718_v37 = vpop.f32.mrf.mxu1 }
 0x11d   :  { %2139 = vst [vmem:[#allocation43_spill] sm:$0xff] %v1716_v36  ;;  %2140 = vst [vmem:[#allocation44_spill] sm:$0xff] %v1718_v37  ;;  %515 = sbr.rel (%p1372_p0) target bundleno = 498 (0x1f2), region = 25 }
 0x11e   :  { %v1720_v38 = vpop.f32.mrf.mxu0  ;;  %v1722_v39 = vpop.f32.mrf.mxu1 }
 0x11f   :  { %2141 = vst [vmem:[#allocation45_spill] sm:$0xff] %v1720_v38  ;;  %2142 = vst [vmem:[#allocation46_spill] sm:$0xff] %v1722_v39 }
 0x120   :  { %v1724_v40 = vpop.f32.mrf.mxu0  ;;  %v1726_v41 = vpop.f32.mrf.mxu1 }
 0x121   :  { %2143 = vst [vmem:[#allocation47_spill] sm:$0xff] %v1724_v40  ;;  %2144 = vst [vmem:[#allocation48_spill] sm:$0xff] %v1726_v41 }
 0x122   :  { %v517_v34 = vlaneseq  ;;  %v516_v35 = vld [vmem:[%s2073_s2] sm:$0xff]  ;;  %vm929_vm0 = vcmask 1041409   ;;  %vm931_vm1 = vcmask 1042434   ;;  %vm933_vm2 = vcmask 1043459  }
 0x123   :  { %vm935_vm3 = vcmask 1044484   ;;  %vm937_vm4 = vcmask 1045509   ;;  %vm939_vm5 = vcmask 1046534   ;;  %vm941_vm6 = vcmask 1047559  }
 0x124   :  { %v518_v29 = vshrl.u32 %v517_v34, 7 }
 0x126   :  { %v530_v37 = vsub.s32 1, %v518_v29  ;;  %v519_v36 = vsub.s32 0, %v518_v29  ;;  %v541_v39 = vsub.s32 2, %v518_v29  ;;  %v552_v40 = vsub.s32 3, %v518_v29 }
 0x127   :  { %v563_v26 = vsub.s32 4, %v518_v29  ;;  %v574_v33 = vsub.s32 5, %v518_v29  ;;  %v596_v32 = vsub.s32 7, %v518_v29 }
 0x128   :  { %v531_v38 = vrot.slane %v516_v35, %v530_v37  ;;  %v520_v27 = vrot.slane %v516_v35, %v519_v36  ;;  %v542_v41 = vrot.slane %v516_v35, %v541_v39  ;;  %v553_v28 = vrot.slane %v516_v35, %v552_v40 }
 0x129   :  { %v564_v34 = vrot.slane %v516_v35, %v563_v26  ;;  %v575_v31 = vrot.slane %v516_v35, %v574_v33  ;;  %v585_v37 = vsub.s32 6, %v518_v29 }
 0x12a   :  { %533 = vbcast.lane.b32.xlu1 %v531_v38, 256  ;;  %522 = vbcast.lane.b32.xlu0 %v520_v27, 256 }
 0x12b   :  { %v586_v36 = vrot.slane %v516_v35, %v585_v37 }
 0x12e   :  { %537 = vbcast.lane.b32.xlu1 %v531_v38, 264  ;;  %526 = vbcast.lane.b32.xlu0 %v520_v27, 264  ;;  %v597_v27 = vrot.slane %v516_v35, %v596_v32 }
 0x132   :  { %548 = vbcast.lane.b32.xlu1 %v542_v41, 264  ;;  %544 = vbcast.lane.b32.xlu0 %v542_v41, 256 }
 0x136   :  { %559 = vbcast.lane.b32.xlu1 %v553_v28, 264  ;;  %555 = vbcast.lane.b32.xlu0 %v553_v28, 256 }
 0x13a   :  { %570 = vbcast.lane.b32.xlu1 %v564_v34, 264  ;;  %566 = vbcast.lane.b32.xlu0 %v564_v34, 256 }
 0x13e   :  { %581 = vbcast.lane.b32.xlu1 %v575_v31, 264  ;;  %577 = vbcast.lane.b32.xlu0 %v575_v31, 256 }
 0x142   :  { %592 = vbcast.lane.b32.xlu1 %v586_v36, 264  ;;  %588 = vbcast.lane.b32.xlu0 %v586_v36, 256 }
 0x146   :  { %603 = vbcast.lane.b32.xlu1 %v597_v27, 264  ;;  %599 = vbcast.lane.b32.xlu0 %v597_v27, 256 }
 0x19c   :  { %v534_v38 = vpop.permute.xlu1 %533  ;;  %v523_v39 = vpop.permute.xlu0 %522 }
 0x19d   :  { %v613_v40 = vadd.f32 %v534_v38, %v1616_v50  ;;  %v614_v26 = vadd.f32 %v534_v38, %v1620_v52  ;;  %v615_v28 = vadd.f32 %v534_v38, %v1618_v51  ;;  %v616_v33 = vadd.f32 %v534_v38, %v1622_v53 }
 0x19e   :  { %v605_v41 = vadd.f32 %v523_v39, %v1600_v42  ;;  %v606_v31 = vadd.f32 %v523_v39, %v1604_v44  ;;  %v607_v29 = vadd.f32 %v523_v39, %v1602_v43  ;;  %v608_v32 = vadd.f32 %v523_v39, %v1606_v45 }
 0x1a0   :  { %v538_v35 = vpop.permute.xlu1 %537  ;;  %v527_v34 = vpop.permute.xlu0 %526 }
 0x1a1   :  { %v617_v37 = vadd.f32 %v538_v35, %v1624_v54  ;;  %v618_v36 = vadd.f32 %v538_v35, %v1628_v56  ;;  %v619_v27 = vadd.f32 %v538_v35, %v1626_v55  ;;  %v620_v51 = vadd.f32 %v538_v35, %v1630_v57 }
 0x1a2   :  { %v609_v38 = vadd.f32 %v527_v34, %v1608_v46  ;;  %v610_v53 = vadd.f32 %v527_v34, %v1612_v48  ;;  %v611_v52 = vadd.f32 %v527_v34, %v1610_v47  ;;  %v612_v50 = vadd.f32 %v527_v34, %v1614_v49 }
 0x1a3   :  { %v701_v43 = vmax.f32 %v613_v40, %v617_v37  ;;  %v708_v39 = vmax.f32 %v614_v26, %v618_v36  ;;  %v715_v45 = vmax.f32 %v615_v28, %v619_v27  ;;  %v722_v44 = vmax.f32 %v616_v33, %v620_v51 }
 0x1a4   :  { %v673_v42 = vmax.f32 %v605_v41, %v609_v38  ;;  %v680_v54 = vmax.f32 %v606_v31, %v610_v53  ;;  %v687_v30 = vmax.f32 %v607_v29, %v611_v52  ;;  %v694_v56 = vmax.f32 %v608_v32, %v612_v50 }
 0x1a5   :  { %v702_v21 = vrot.slane %v701_v43, 4  ;;  %v709_v55 = vrot.slane %v708_v39, 4  ;;  %v716_v19 = vrot.slane %v715_v45, 4  ;;  %v723_v35 = vrot.slane %v722_v44, 4 }
 0x1a6   :  { %v674_v57 = vrot.slane %v673_v42, 4  ;;  %v681_v46 = vrot.slane %v680_v54, 4  ;;  %v688_v20 = vrot.slane %v687_v30, 4  ;;  %v695_v48 = vrot.slane %v694_v56, 4 }
 0x1a7   :  { %v703_v18 = vmax.f32 %v701_v43, %v702_v21  ;;  %v710_v47 = vmax.f32 %v708_v39, %v709_v55  ;;  %v717_v25 = vmax.f32 %v715_v45, %v716_v19  ;;  %v724_v34 = vmax.f32 %v722_v44, %v723_v35  ;;  %v549_v43 = vpop.permute.xlu1 %548 }
 0x1a8   :  { %v675_v40 = vmax.f32 %v673_v42, %v674_v57  ;;  %v682_v26 = vmax.f32 %v680_v54, %v681_v46  ;;  %v689_v28 = vmax.f32 %v687_v30, %v688_v20  ;;  %v696_v51 = vmax.f32 %v694_v56, %v695_v48  ;;  %v545_v57 = vpop.permute.xlu0 %544 }
 0x1a9   :  { %v704_v33 = vrot.slane %v703_v18, 2  ;;  %v711_v53 = vrot.slane %v710_v47, 2  ;;  %v718_v52 = vrot.slane %v717_v25, 2  ;;  %v725_v50 = vrot.slane %v724_v34, 2 }
 0x1aa   :  { %v676_v41 = vrot.slane %v675_v40, 2  ;;  %v683_v31 = vrot.slane %v682_v26, 2  ;;  %v690_v29 = vrot.slane %v689_v28, 2  ;;  %v697_v32 = vrot.slane %v696_v51, 2 }
 0x1ab   :  { %v705_v37 = vmax.f32 %v703_v18, %v704_v33  ;;  %v712_v36 = vmax.f32 %v710_v47, %v711_v53  ;;  %v719_v27 = vmax.f32 %v717_v25, %v718_v52  ;;  %v726_v38 = vmax.f32 %v724_v34, %v725_v50 }
 0x1ac   :  { %v677_v55 = vmax.f32 %v675_v40, %v676_v41  ;;  %v684_v45 = vmax.f32 %v682_v26, %v683_v31  ;;  %v691_v44 = vmax.f32 %v689_v28, %v690_v29  ;;  %v698_v42 = vmax.f32 %v696_v51, %v697_v32  ;;  %v560_v28 = vpop.permute.xlu1 %559  ;;  %v556_v32 = vpop.permute.xlu0 %555 }
 0x1ad   :  { %v706_v46 = vrot.slane %v705_v37, 1  ;;  %v713_v54 = vrot.slane %v712_v36, 1  ;;  %v720_v48 = vrot.slane %v719_v27, 1  ;;  %v727_v56 = vrot.slane %v726_v38, 1 }
 0x1ae   :  { %v678_v19 = vrot.slane %v677_v55, 1  ;;  %v685_v20 = vrot.slane %v684_v45, 1  ;;  %v692_v21 = vrot.slane %v691_v44, 1  ;;  %v699_v30 = vrot.slane %v698_v42, 1 }
 0x1af   :  { %v1750_v39 = vmax.f32 %v705_v37, %v706_v46  ;;  %v1752_v18 = vmax.f32 %v712_v36, %v713_v54  ;;  %v1754_v47 = vmax.f32 %v719_v27, %v720_v48  ;;  %v1756_v25 = vmax.f32 %v726_v38, %v727_v56 }
 0x1b0   :  { %v625_v35 = vadd.f32 %v549_v43, %v1640_v62  ;;  %v626_v34 = vadd.f32 %v549_v43, %v1644_v0  ;;  %v627_v40 = vadd.f32 %v549_v43, %v1642_v63  ;;  %v628_v26 = vadd.f32 %v549_v43, %v1646_v1 }
 0x1b1   :  { %v1762_v51 = vmax.f32 %v677_v55, %v678_v19  ;;  %v1764_v33 = vmax.f32 %v684_v45, %v685_v20  ;;  %v1766_v53 = vmax.f32 %v691_v44, %v692_v21  ;;  %v1768_v52 = vmax.f32 %v698_v42, %v699_v30 }
 0x1b2   :  { %v621_v50 = vadd.f32 %v545_v57, %v1632_v58  ;;  %v622_v41 = vadd.f32 %v545_v57, %v1636_v60  ;;  %v623_v31 = vadd.f32 %v545_v57, %v1634_v59  ;;  %v624_v29 = vadd.f32 %v545_v57, %v1638_v61 }
 0x1b3   :  { %v633_v37 = vadd.f32 %v560_v28, %v1656_v6  ;;  %v634_v36 = vadd.f32 %v560_v28, %v1660_v8  ;;  %v635_v27 = vadd.f32 %v560_v28, %v1658_v7  ;;  %v636_v38 = vadd.f32 %v560_v28, %v1662_v9 }
 0x1b4   :  { %v729_v43 = vmax.f32 %v621_v50, %v625_v35  ;;  %v736_v55 = vmax.f32 %v622_v41, %v626_v34  ;;  %v743_v45 = vmax.f32 %v623_v31, %v627_v40  ;;  %v750_v44 = vmax.f32 %v624_v29, %v628_v26 }
 0x1b5   :  { %v629_v42 = vadd.f32 %v556_v32, %v1648_v2  ;;  %v630_v46 = vadd.f32 %v556_v32, %v1652_v4  ;;  %v631_v54 = vadd.f32 %v556_v32, %v1650_v3  ;;  %v632_v48 = vadd.f32 %v556_v32, %v1654_v5 }
 0x1b6   :  { %v730_v56 = vrot.slane %v729_v43, 4  ;;  %v737_v57 = vrot.slane %v736_v55, 4  ;;  %v744_v19 = vrot.slane %v743_v45, 4  ;;  %v751_v20 = vrot.slane %v750_v44, 4 }
 0x1b7   :  { %v757_v21 = vmax.f32 %v629_v42, %v633_v37  ;;  %v764_v30 = vmax.f32 %v630_v46, %v634_v36  ;;  %v771_v28 = vmax.f32 %v631_v54, %v635_v27  ;;  %v778_v35 = vmax.f32 %v632_v48, %v636_v38 }
 0x1b8   :  { %v731_v34 = vmax.f32 %v729_v43, %v730_v56  ;;  %v738_v40 = vmax.f32 %v736_v55, %v737_v57  ;;  %v745_v26 = vmax.f32 %v743_v45, %v744_v19  ;;  %v752_v50 = vmax.f32 %v750_v44, %v751_v20  ;;  %v571_v57 = vpop.permute.xlu1 %570 }
 0x1b9   :  { %v758_v41 = vrot.slane %v757_v21, 4  ;;  %v765_v31 = vrot.slane %v764_v30, 4  ;;  %v772_v29 = vrot.slane %v771_v28, 4  ;;  %v779_v9 = vrot.slane %v778_v35, 4 }
 0x1ba   :  { %v732_v3 = vrot.slane %v731_v34, 2  ;;  %v739_v32 = vrot.slane %v738_v40, 2  ;;  %v746_v5 = vrot.slane %v745_v26, 2  ;;  %v753_v7 = vrot.slane %v752_v50, 2 }
 0x1bb   :  { %v759_v4 = vmax.f32 %v757_v21, %v758_v41  ;;  %v766_v8 = vmax.f32 %v764_v30, %v765_v31  ;;  %v773_v2 = vmax.f32 %v771_v28, %v772_v29  ;;  %v780_v37 = vmax.f32 %v778_v35, %v779_v9  ;;  %v567_v35 = vpop.permute.xlu0 %566 }
 0x1bc   :  { %v733_v36 = vmax.f32 %v731_v34, %v732_v3  ;;  %v740_v27 = vmax.f32 %v738_v40, %v739_v32  ;;  %v747_v38 = vmax.f32 %v745_v26, %v746_v5  ;;  %v754_v42 = vmax.f32 %v752_v50, %v753_v7 }
 0x1bd   :  { %v760_v43 = vrot.slane %v759_v4, 2  ;;  %v767_v55 = vrot.slane %v766_v8, 2  ;;  %v774_v45 = vrot.slane %v773_v2, 2  ;;  %v781_v44 = vrot.slane %v780_v37, 2 }
 0x1be   :  { %v734_v46 = vrot.slane %v733_v36, 1  ;;  %v741_v54 = vrot.slane %v740_v27, 1  ;;  %v748_v48 = vrot.slane %v747_v38, 1  ;;  %v755_v56 = vrot.slane %v754_v42, 1 }
 0x1bf   :  { %v761_v19 = vmax.f32 %v759_v4, %v760_v43  ;;  %v768_v20 = vmax.f32 %v766_v8, %v767_v55  ;;  %v775_v6 = vmax.f32 %v773_v2, %v774_v45  ;;  %v782_v21 = vmax.f32 %v780_v37, %v781_v44  ;;  %v2145_v44 = vld [vmem:[#allocation32_spill] sm:$0xff] }
 0x1c0   :  { %v735_v30 = vmax.f32 %v733_v36, %v734_v46  ;;  %v742_v28 = vmax.f32 %v740_v27, %v741_v54  ;;  %v749_v9 = vmax.f32 %v747_v38, %v748_v48  ;;  %v756_v3 = vmax.f32 %v754_v42, %v755_v56  ;;  %v578_v42 = vpop.permute.xlu0 %577 }
 0x1c1   :  { %v762_v5 = vrot.slane %v761_v19, 1  ;;  %v769_v7 = vrot.slane %v768_v20, 1  ;;  %v776_v34 = vrot.slane %v775_v6, 1  ;;  %v783_v40 = vrot.slane %v782_v21, 1 }
 0x1c2   :  { %v930_v26 = vsel %vm929_vm0, %v1750_v39, %v1762_v51  ;;  %v943_v4 = vsel %vm929_vm0, %v1752_v18, %v1764_v33  ;;  %v950_v2 = vsel %vm929_vm0, %v1754_v47, %v1766_v53  ;;  %v957_v8 = vsel %vm929_vm0, %v1756_v25, %v1768_v52  ;;  %v582_v53 = vpop.permute.xlu1 %581 }
 0x1c3   :  { %v1795_v50 = vsel %vm931_vm1, %v735_v30, %v930_v26  ;;  %v1798_v41 = vsel %vm931_vm1, %v742_v28, %v943_v4  ;;  %v1801_v39 = vsel %vm931_vm1, %v749_v9, %v950_v2  ;;  %v1804_v51 = vsel %vm931_vm1, %v756_v3, %v957_v8  ;;  %v2148_v30 = vld [vmem:[#allocation29_spill] sm:$0xff]  ;;  %v2149_v9 = vld [vmem:[#allocation31_spill] sm:$0xff] }
 0x1c4   :  { %v641_v18 = vadd.f32 %v571_v57, %v1672_v14  ;;  %v642_v47 = vadd.f32 %v571_v57, %v1676_v16  ;;  %v643_v33 = vadd.f32 %v571_v57, %v1674_v15  ;;  %v644_v25 = vadd.f32 %v571_v57, %v1678_v17  ;;  %v2146_v57 = vld [vmem:[#allocation28_spill] sm:$0xff] }
 0x1c5   :  { %v1810_v52 = vmax.f32 %v761_v19, %v762_v5  ;;  %v1812_v31 = vmax.f32 %v768_v20, %v769_v7  ;;  %v1814_v29 = vmax.f32 %v775_v6, %v776_v34  ;;  %v1816_v32 = vmax.f32 %v782_v21, %v783_v40  ;;  %v2147_v20 = vld [vmem:[#allocation30_spill] sm:$0xff] }
 0x1c6   :  { %v637_v37 = vadd.f32 %v567_v35, %v1664_v10  ;;  %v638_v36 = vadd.f32 %v567_v35, %v1668_v12  ;;  %v639_v27 = vadd.f32 %v567_v35, %v1666_v11  ;;  %v640_v38 = vadd.f32 %v567_v35, %v1670_v13 }
 0x1c7   :  { %v649_v43 = vadd.f32 %v582_v53, %v1688_v22  ;;  %v650_v55 = vadd.f32 %v582_v53, %v1692_v24  ;;  %v651_v45 = vadd.f32 %v582_v53, %v1690_v23  ;;  %v652_v6 = vadd.f32 %v582_v53, %v2145_v44 }
 0x1c8   :  { %v785_v46 = vmax.f32 %v637_v37, %v641_v18  ;;  %v792_v54 = vmax.f32 %v638_v36, %v642_v47  ;;  %v799_v48 = vmax.f32 %v639_v27, %v643_v33  ;;  %v806_v56 = vmax.f32 %v640_v38, %v644_v25 }
 0x1c9   :  { %v645_v19 = vadd.f32 %v578_v42, %v2146_v57  ;;  %v646_v21 = vadd.f32 %v578_v42, %v2147_v20  ;;  %v647_v28 = vadd.f32 %v578_v42, %v2148_v30  ;;  %v648_v3 = vadd.f32 %v578_v42, %v2149_v9 }
 0x1ca   :  { %v786_v35 = vrot.slane %v785_v46, 4  ;;  %v793_v5 = vrot.slane %v792_v54, 4  ;;  %v800_v7 = vrot.slane %v799_v48, 4  ;;  %v807_v34 = vrot.slane %v806_v56, 4 }
 0x1cb   :  { %v813_v40 = vmax.f32 %v645_v19, %v649_v43  ;;  %v820_v26 = vmax.f32 %v646_v21, %v650_v55  ;;  %v827_v4 = vmax.f32 %v647_v28, %v651_v45  ;;  %v834_v2 = vmax.f32 %v648_v3, %v652_v6 }
 0x1cc   :  { %v787_v8 = vmax.f32 %v785_v46, %v786_v35  ;;  %v794_v18 = vmax.f32 %v792_v54, %v793_v5  ;;  %v801_v47 = vmax.f32 %v799_v48, %v800_v7  ;;  %v808_v33 = vmax.f32 %v806_v56, %v807_v34  ;;  %v593_v35 = vpop.permute.xlu1 %592 }
 0x1cd   :  { %v814_v25 = vrot.slane %v813_v40, 4  ;;  %v821_v53 = vrot.slane %v820_v26, 4  ;;  %v828_v37 = vrot.slane %v827_v4, 4  ;;  %v835_v36 = vrot.slane %v834_v2, 4 }
 0x1ce   :  { %v788_v27 = vrot.slane %v787_v8, 2  ;;  %v795_v38 = vrot.slane %v794_v18, 2  ;;  %v802_v42 = vrot.slane %v801_v47, 2  ;;  %v809_v44 = vrot.slane %v808_v33, 2 }
 0x1cf   :  { %v815_v57 = vmax.f32 %v813_v40, %v814_v25  ;;  %v822_v20 = vmax.f32 %v820_v26, %v821_v53  ;;  %v829_v30 = vmax.f32 %v827_v4, %v828_v37  ;;  %v836_v43 = vmax.f32 %v834_v2, %v835_v36 }
 0x1d0   :  { %v789_v55 = vmax.f32 %v787_v8, %v788_v27  ;;  %v796_v45 = vmax.f32 %v794_v18, %v795_v38  ;;  %v803_v6 = vmax.f32 %v801_v47, %v802_v42  ;;  %v810_v19 = vmax.f32 %v808_v33, %v809_v44  ;;  %v589_v18 = vpop.permute.xlu0 %588 }
 0x1d1   :  { %v816_v46 = vrot.slane %v815_v57, 2  ;;  %v823_v54 = vrot.slane %v822_v20, 2  ;;  %v830_v48 = vrot.slane %v829_v30, 2  ;;  %v837_v56 = vrot.slane %v836_v43, 2 }
 0x1d2   :  { %v790_v21 = vrot.slane %v789_v55, 1  ;;  %v797_v28 = vrot.slane %v796_v45, 1  ;;  %v804_v9 = vrot.slane %v803_v6, 1  ;;  %v811_v3 = vrot.slane %v810_v19, 1 }
 0x1d3   :  { %v817_v5 = vmax.f32 %v815_v57, %v816_v46  ;;  %v824_v7 = vmax.f32 %v822_v20, %v823_v54  ;;  %v831_v34 = vmax.f32 %v829_v30, %v830_v48  ;;  %v838_v40 = vmax.f32 %v836_v43, %v837_v56  ;;  %v2151_v57 = vld [vmem:[#allocation39_spill] sm:$0xff]  ;;  %v2153_v30 = vld [vmem:[#allocation40_spill] sm:$0xff]  ;;  %v2156_v56 = vld [vmem:[#allocation34_spill] sm:$0xff] }
 0x1d4   :  { %v791_v26 = vmax.f32 %v789_v55, %v790_v21  ;;  %v798_v4 = vmax.f32 %v796_v45, %v797_v28  ;;  %v805_v2 = vmax.f32 %v803_v6, %v804_v9  ;;  %v812_v8 = vmax.f32 %v810_v19, %v811_v3  ;;  %v2154_v19 = vld [vmem:[#allocation33_spill] sm:$0xff]  ;;  %v2155_v54 = vld [vmem:[#allocation35_spill] sm:$0xff]  ;;  %v2157_v28 = vld [vmem:[#allocation36_spill] sm:$0xff]  ;;  %v600_v3 = vpop.permute.xlu0 %599 }
 0x1d5   :  { %v818_v47 = vrot.slane %v817_v5, 1  ;;  %v825_v33 = vrot.slane %v824_v7, 1  ;;  %v832_v25 = vrot.slane %v831_v34, 1  ;;  %v839_v53 = vrot.slane %v838_v40, 1 }
 0x1d6   :  { %v934_v37 = vsel %vm933_vm2, %v1810_v52, %v1795_v50  ;;  %v945_v36 = vsel %vm933_vm2, %v1812_v31, %v1798_v41  ;;  %v952_v27 = vsel %vm933_vm2, %v1814_v29, %v1801_v39  ;;  %v959_v38 = vsel %vm933_vm2, %v1816_v32, %v1804_v51  ;;  %v2150_v41 = vld [vmem:[#allocation37_spill] sm:$0xff]  ;;  %v2152_v29 = vld [vmem:[#allocation38_spill] sm:$0xff]  ;;  %v604_v32 = vpop.permute.xlu1 %603 }
 0x1d7   :  { %v1843_v42 = vsel %vm935_vm3, %v791_v26, %v934_v37  ;;  %v1846_v44 = vsel %vm935_vm3, %v798_v4, %v945_v36  ;;  %v1849_v50 = vsel %vm935_vm3, %v805_v2, %v952_v27  ;;  %v1852_v52 = vsel %vm935_vm3, %v812_v8, %v959_v38  ;;  %v2158_v26 = vld [vmem:[#allocation45_spill] sm:$0xff]  ;;  %v2159_v4 = vld [vmem:[#allocation47_spill] sm:$0xff]  ;;  %v2160_v2 = vld [vmem:[#allocation46_spill] sm:$0xff] }
 0x1d8   :  { %v657_v31 = vadd.f32 %v593_v35, %v2150_v41  ;;  %v658_v39 = vadd.f32 %v593_v35, %v2151_v57  ;;  %v659_v20 = vadd.f32 %v593_v35, %v2152_v29  ;;  %v660_v51 = vadd.f32 %v593_v35, %v2153_v30  ;;  %v2161_v8 = vld [vmem:[#allocation48_spill] sm:$0xff]  ;;  %v2163_v36 = vld [vmem:[#allocation43_spill] sm:$0xff]  ;;  %v2164_v38 = vld [vmem:[#allocation42_spill] sm:$0xff] }
 0x1d9   :  { %v1858_v43 = vmax.f32 %v817_v5, %v818_v47  ;;  %v1860_v55 = vmax.f32 %v824_v7, %v825_v33  ;;  %v1862_v45 = vmax.f32 %v831_v34, %v832_v25  ;;  %v1864_v6 = vmax.f32 %v838_v40, %v839_v53  ;;  %v2162_v53 = vld [vmem:[#allocation41_spill] sm:$0xff] }
 0x1da   :  { %v653_v46 = vadd.f32 %v589_v18, %v2154_v19  ;;  %v654_v48 = vadd.f32 %v589_v18, %v2155_v54  ;;  %v655_v21 = vadd.f32 %v589_v18, %v2156_v56  ;;  %v656_v9 = vadd.f32 %v589_v18, %v2157_v28  ;;  %v2165_v18 = vld [vmem:[#allocation44_spill] sm:$0xff] }
 0x1db   :  { %v665_v35 = vadd.f32 %v604_v32, %v2158_v26  ;;  %v666_v5 = vadd.f32 %v604_v32, %v2159_v4  ;;  %v667_v7 = vadd.f32 %v604_v32, %v2160_v2  ;;  %v668_v34 = vadd.f32 %v604_v32, %v2161_v8 }
 0x1dc   :  { %v841_v47 = vmax.f32 %v653_v46, %v657_v31  ;;  %v848_v40 = vmax.f32 %v654_v48, %v658_v39  ;;  %v855_v33 = vmax.f32 %v655_v21, %v659_v20  ;;  %v862_v25 = vmax.f32 %v656_v9, %v660_v51 }
 0x1dd   :  { %v661_v37 = vadd.f32 %v600_v3, %v2162_v53  ;;  %v662_v27 = vadd.f32 %v600_v3, %v2163_v36  ;;  %v663_v41 = vadd.f32 %v600_v3, %v2164_v38  ;;  %v664_v57 = vadd.f32 %v600_v3, %v2165_v18 }
 0x1de   :  { %v842_v29 = vrot.slane %v841_v47, 4  ;;  %v849_v30 = vrot.slane %v848_v40, 4  ;;  %v856_v19 = vrot.slane %v855_v33, 4  ;;  %v863_v54 = vrot.slane %v862_v25, 4 }
 0x1df   :  { %v869_v56 = vmax.f32 %v661_v37, %v665_v35  ;;  %v876_v28 = vmax.f32 %v662_v27, %v666_v5  ;;  %v883_v32 = vmax.f32 %v663_v41, %v667_v7  ;;  %v890_v31 = vmax.f32 %v664_v57, %v668_v34 }
 0x1e0   :  { %v843_v39 = vmax.f32 %v841_v47, %v842_v29  ;;  %v850_v20 = vmax.f32 %v848_v40, %v849_v30  ;;  %v857_v51 = vmax.f32 %v855_v33, %v856_v19  ;;  %v864_v46 = vmax.f32 %v862_v25, %v863_v54 }
 0x1e1   :  { %v870_v48 = vrot.slane %v869_v56, 4  ;;  %v877_v21 = vrot.slane %v876_v28, 4  ;;  %v884_v9 = vrot.slane %v883_v32, 4  ;;  %v891_v26 = vrot.slane %v890_v31, 4 }
 0x1e2   :  { %v844_v4 = vrot.slane %v843_v39, 2  ;;  %v851_v3 = vrot.slane %v850_v20, 2  ;;  %v858_v2 = vrot.slane %v857_v51, 2  ;;  %v865_v8 = vrot.slane %v864_v46, 2 }
 0x1e3   :  { %v871_v53 = vmax.f32 %v869_v56, %v870_v48  ;;  %v878_v36 = vmax.f32 %v876_v28, %v877_v21  ;;  %v885_v35 = vmax.f32 %v883_v32, %v884_v9  ;;  %v892_v5 = vmax.f32 %v890_v31, %v891_v26 }
 0x1e4   :  { %v845_v7 = vmax.f32 %v843_v39, %v844_v4  ;;  %v852_v34 = vmax.f32 %v850_v20, %v851_v3  ;;  %v859_v47 = vmax.f32 %v857_v51, %v858_v2  ;;  %v866_v40 = vmax.f32 %v864_v46, %v865_v8  ;;  %v669_v4 = vld [vmem:[#allocation2 + $0x10] sm:$0xff]  ;;  %v670_v3 = vld [vmem:[#allocation2] sm:$0xff]  ;;  %v671_v2 = vld [vmem:[#allocation2 + $0x18] sm:$0xff] }
 0x1e5   :  { %v872_v33 = vrot.slane %v871_v53, 2  ;;  %v879_v25 = vrot.slane %v878_v36, 2  ;;  %v886_v37 = vrot.slane %v885_v35, 2  ;;  %v893_v27 = vrot.slane %v892_v5, 2  ;;  %v672_v8 = vld [vmem:[#allocation2 + $0x8] sm:$0xff] }
 0x1e6   :  { %v846_v38 = vrot.slane %v845_v7, 1  ;;  %v853_v41 = vrot.slane %v852_v34, 1  ;;  %v860_v18 = vrot.slane %v859_v47, 1  ;;  %v867_v57 = vrot.slane %v866_v40, 1 }
 0x1e7   :  { %v873_v29 = vmax.f32 %v871_v53, %v872_v33  ;;  %v880_v30 = vmax.f32 %v878_v36, %v879_v25  ;;  %v887_v19 = vmax.f32 %v885_v35, %v886_v37  ;;  %v894_v54 = vmax.f32 %v892_v5, %v893_v27 }
 0x1e8   :  { %v847_v56 = vmax.f32 %v845_v7, %v846_v38  ;;  %v854_v28 = vmax.f32 %v852_v34, %v853_v41  ;;  %v861_v32 = vmax.f32 %v859_v47, %v860_v18  ;;  %v868_v31 = vmax.f32 %v866_v40, %v867_v57 }
 0x1e9   :  { %v874_v39 = vrot.slane %v873_v29, 1  ;;  %v881_v20 = vrot.slane %v880_v30, 1  ;;  %v888_v51 = vrot.slane %v887_v19, 1  ;;  %v895_v46 = vrot.slane %v894_v54, 1 }
 0x1ea   :  { %v938_v48 = vsel %vm937_vm4, %v1858_v43, %v1843_v42  ;;  %v947_v21 = vsel %vm937_vm4, %v1860_v55, %v1846_v44  ;;  %v954_v9 = vsel %vm937_vm4, %v1862_v45, %v1849_v50  ;;  %v961_v26 = vsel %vm937_vm4, %v1864_v6, %v1852_v52 }
 0x1eb   :  { %v875_v53 = vmax.f32 %v873_v29, %v874_v39  ;;  %v882_v36 = vmax.f32 %v880_v30, %v881_v20  ;;  %v889_v35 = vmax.f32 %v887_v19, %v888_v51  ;;  %v896_v42 = vmax.f32 %v894_v54, %v895_v46 }
 0x1ec   :  { %v940_v43 = vsel %vm939_vm5, %v847_v56, %v938_v48  ;;  %v948_v44 = vsel %vm939_vm5, %v854_v28, %v947_v21  ;;  %v955_v55 = vsel %vm939_vm5, %v861_v32, %v954_v9  ;;  %v962_v50 = vsel %vm939_vm5, %v868_v31, %v961_v26 }
 0x1ed   :  { %v942_v45 = vsel %vm941_vm6, %v875_v53, %v940_v43  ;;  %v949_v52 = vsel %vm941_vm6, %v882_v36, %v948_v44  ;;  %v956_v6 = vsel %vm941_vm6, %v889_v35, %v955_v55  ;;  %v963_v5 = vsel %vm941_vm6, %v896_v42, %v962_v50 }
 0x1ee   :  { %v968_v7 = vmax.f32 %v669_v4, %v942_v45  ;;  %v969_v34 = vmax.f32 %v670_v3, %v949_v52  ;;  %v970_v47 = vmax.f32 %v671_v2, %v956_v6  ;;  %v971_v40 = vmax.f32 %v672_v8, %v963_v5 }
 0x1f0   :  { %972 = vst [vmem:[#allocation2 + $0x10] sm:$0xff] %v968_v7  ;;  %973 = vst [vmem:[#allocation2] sm:$0xff] %v969_v34 }
 0x1f1   :  { %974 = vst [vmem:[#allocation2 + $0x18] sm:$0xff] %v970_v47  ;;  %975 = vst [vmem:[#allocation2 + $0x8] sm:$0xff] %v971_v40 }
 0x1f2 PF:  { %p1373_p1 = scmp.ne.s32.totalorder %s2072_s0, 0 }
 0x1f4   :  { %979 = sbr.rel (%p1373_p1) target bundleno = 575 (0x23f), region = 29 }
 0x1f9   :  { %v2166_v33 = vld [vmem:[#allocation9_spill] sm:$0xff]  ;;  %v2168_v27 = vld [vmem:[#allocation11_spill] sm:$0xff]  ;;  %v2170_v18 = vld [vmem:[#allocation10_spill] sm:$0xff]  ;;  %vm1240_vm7 = vcmask 1041409   ;;  %vm1242_vm8 = vcmask 1042434   ;;  %vm1244_vm9 = vcmask 1043459  }
 0x1fa   :  { %v2167_v25 = vld [vmem:[#allocation5_spill] sm:$0xff]  ;;  %v2169_v38 = vld [vmem:[#allocation7_spill] sm:$0xff]  ;;  %v2171_v57 = vld [vmem:[#allocation6_spill] sm:$0xff]  ;;  %vm1246_vm10 = vcmask 1044484   ;;  %vm1248_vm11 = vcmask 1045509   ;;  %vm1250_vm12 = vcmask 1046534  }
 0x1fb   :  { %v984_v37 = vmax.f32 %v2167_v25, %v2166_v33  ;;  %v991_v41 = vmax.f32 %v2169_v38, %v2168_v27  ;;  %v998_v29 = vmax.f32 %v2171_v57, %v2170_v18  ;;  %v2172_v30 = vld [vmem:[#allocation8_spill] sm:$0xff]  ;;  %v2175_v32 = vld [vmem:[#allocation18_spill] sm:$0xff]  ;;  %v2177_v20 = vld [vmem:[#allocation17_spill] sm:$0xff]  ;;  %vm1252_vm13 = vcmask 1047559  }
 0x1fc   :  { %v1005_v19 = vmax.f32 %v2172_v30, %v1614_v49  ;;  %v2173_v54 = vld [vmem:[#allocation16_spill] sm:$0xff]  ;;  %v2176_v31 = vld [vmem:[#allocation14_spill] sm:$0xff]  ;;  %v2178_v51 = vld [vmem:[#allocation13_spill] sm:$0xff] }
 0x1fd   :  { %v2174_v56 = vld [vmem:[#allocation12_spill] sm:$0xff]  ;;  %v1019_v39 = vmax.f32 %v2176_v31, %v2175_v32  ;;  %v1026_v46 = vmax.f32 %v2178_v51, %v2177_v20  ;;  %v2179_v48 = vld [vmem:[#allocation19_spill] sm:$0xff]  ;;  %v985_v26 = vrot.slane %v984_v37, 4  ;;  %v992_v4 = vrot.slane %v991_v41, 4 }
 0x1fe   :  { %v1012_v28 = vmax.f32 %v2174_v56, %v2173_v54  ;;  %v2180_v21 = vld [vmem:[#allocation15_spill] sm:$0xff]  ;;  %v999_v3 = vrot.slane %v998_v29, 4  ;;  %v1006_v2 = vrot.slane %v1005_v19, 4 }
 0x1ff   :  { %v1033_v9 = vmax.f32 %v2180_v21, %v2179_v48  ;;  %v1020_v53 = vrot.slane %v1019_v39, 4  ;;  %v1027_v36 = vrot.slane %v1026_v46, 4  ;;  %v986_v35 = vmax.f32 %v984_v37, %v985_v26 }
 0x200   :  { %v1013_v8 = vrot.slane %v1012_v28, 4  ;;  %v993_v42 = vmax.f32 %v991_v41, %v992_v4  ;;  %v1000_v43 = vmax.f32 %v998_v29, %v999_v3  ;;  %v1007_v44 = vmax.f32 %v1005_v19, %v1006_v2 }
 0x201   :  { %v1034_v49 = vrot.slane %v1033_v9, 4  ;;  %v1021_v50 = vmax.f32 %v1019_v39, %v1020_v53  ;;  %v1028_v45 = vmax.f32 %v1026_v46, %v1027_v36  ;;  %v987_v6 = vrot.slane %v986_v35, 2 }
 0x202   :  { %v1014_v55 = vmax.f32 %v1012_v28, %v1013_v8  ;;  %v994_v5 = vrot.slane %v993_v42, 2  ;;  %v1001_v7 = vrot.slane %v1000_v43, 2  ;;  %v1008_v34 = vrot.slane %v1007_v44, 2 }
 0x203   :  { %v1035_v52 = vmax.f32 %v1033_v9, %v1034_v49  ;;  %v1022_v40 = vrot.slane %v1021_v50, 2  ;;  %v1029_v33 = vrot.slane %v1028_v45, 2  ;;  %v988_v27 = vmax.f32 %v986_v35, %v987_v6  ;;  %v2181_v49 = vld [vmem:[#allocation24_spill] sm:$0xff]  ;;  %v2187_v6 = vld [vmem:[#allocation27_spill] sm:$0xff] }
 0x204   :  { %v1015_v47 = vrot.slane %v1014_v55, 2  ;;  %v995_v38 = vmax.f32 %v993_v42, %v994_v5  ;;  %v1002_v18 = vmax.f32 %v1000_v43, %v1001_v7  ;;  %v1009_v57 = vmax.f32 %v1007_v44, %v1008_v34  ;;  %v2182_v35 = vld [vmem:[#allocation20_spill] sm:$0xff]  ;;  %v2183_v43 = vld [vmem:[#allocation26_spill] sm:$0xff] }
 0x205   :  { %v1036_v25 = vrot.slane %v1035_v52, 2  ;;  %v1023_v41 = vmax.f32 %v1021_v50, %v1022_v40  ;;  %v1030_v29 = vmax.f32 %v1028_v45, %v1029_v33  ;;  %v989_v19 = vrot.slane %v988_v27, 1  ;;  %v2184_v44 = vld [vmem:[#allocation22_spill] sm:$0xff]  ;;  %v2185_v50 = vld [vmem:[#allocation25_spill] sm:$0xff] }
 0x206   :  { %v1016_v37 = vmax.f32 %v1014_v55, %v1015_v47  ;;  %v996_v54 = vrot.slane %v995_v38, 1  ;;  %v1003_v56 = vrot.slane %v1002_v18, 1  ;;  %v1010_v28 = vrot.slane %v1009_v57, 1  ;;  %v2186_v45 = vld [vmem:[#allocation21_spill] sm:$0xff] }
 0x207   :  { %v1037_v30 = vmax.f32 %v1035_v52, %v1036_v25  ;;  %v1024_v31 = vrot.slane %v1023_v41, 1  ;;  %v1031_v39 = vrot.slane %v1030_v29, 1  ;;  %v1917_v51 = vmax.f32 %v988_v27, %v989_v19 }
 0x208   :  { %v1017_v32 = vrot.slane %v1016_v37, 1  ;;  %v1919_v46 = vmax.f32 %v995_v38, %v996_v54  ;;  %v1921_v48 = vmax.f32 %v1002_v18, %v1003_v56  ;;  %v1923_v21 = vmax.f32 %v1009_v57, %v1010_v28 }
 0x209   :  { %v1038_v20 = vrot.slane %v1037_v30, 1  ;;  %v1927_v26 = vmax.f32 %v1023_v41, %v1024_v31  ;;  %v1929_v4 = vmax.f32 %v1030_v29, %v1031_v39  ;;  %v1040_v2 = vmax.f32 %v1632_v58, %v1640_v62  ;;  %v2188_v58 = vld [vmem:[#allocation23_spill] sm:$0xff] }
 0x20a   :  { %v1925_v9 = vmax.f32 %v1016_v37, %v1017_v32  ;;  %v1047_v8 = vmax.f32 %v1636_v60, %v1644_v0  ;;  %v1054_v53 = vmax.f32 %v1634_v59, %v1642_v63  ;;  %v1061_v36 = vmax.f32 %v1638_v61, %v1646_v1 }
 0x20b   :  { %v1931_v3 = vmax.f32 %v1037_v30, %v1038_v20  ;;  %v1068_v42 = vmax.f32 %v2182_v35, %v2181_v49  ;;  %v1075_v55 = vmax.f32 %v2184_v44, %v2183_v43  ;;  %v1082_v52 = vmax.f32 %v2186_v45, %v2185_v50 }
 0x20c   :  { %v1089_v62 = vmax.f32 %v2188_v58, %v2187_v6  ;;  %v1041_v5 = vrot.slane %v1040_v2, 4  ;;  %v1048_v60 = vrot.slane %v1047_v8, 4  ;;  %v1055_v0 = vrot.slane %v1054_v53, 4 }
 0x20d   :  { %v1062_v7 = vrot.slane %v1061_v36, 4  ;;  %v1069_v59 = vrot.slane %v1068_v42, 4  ;;  %v1076_v63 = vrot.slane %v1075_v55, 4  ;;  %v1083_v34 = vrot.slane %v1082_v52, 4 }
 0x20e   :  { %v1090_v61 = vrot.slane %v1089_v62, 4  ;;  %v1042_v1 = vmax.f32 %v1040_v2, %v1041_v5  ;;  %v1049_v47 = vmax.f32 %v1047_v8, %v1048_v60  ;;  %v1056_v40 = vmax.f32 %v1054_v53, %v1055_v0 }
 0x20f   :  { %v1063_v33 = vmax.f32 %v1061_v36, %v1062_v7  ;;  %v1070_v25 = vmax.f32 %v1068_v42, %v1069_v59  ;;  %v1077_v27 = vmax.f32 %v1075_v55, %v1076_v63  ;;  %v1084_v38 = vmax.f32 %v1082_v52, %v1083_v34 }
 0x210   :  { %v1091_v18 = vmax.f32 %v1089_v62, %v1090_v61  ;;  %v1043_v57 = vrot.slane %v1042_v1, 2  ;;  %v1050_v37 = vrot.slane %v1049_v47, 2  ;;  %v1057_v41 = vrot.slane %v1056_v40, 2  ;;  %v2189_v61 = vld [vmem:[#allocation28_spill] sm:$0xff] }
 0x211   :  { %v1064_v29 = vrot.slane %v1063_v33, 2  ;;  %v1071_v30 = vrot.slane %v1070_v25, 2  ;;  %v1078_v19 = vrot.slane %v1077_v27, 2  ;;  %v1085_v54 = vrot.slane %v1084_v38, 2 }
 0x212   :  { %v1092_v56 = vrot.slane %v1091_v18, 2  ;;  %v1044_v28 = vmax.f32 %v1042_v1, %v1043_v57  ;;  %v1051_v32 = vmax.f32 %v1049_v47, %v1050_v37  ;;  %v1058_v31 = vmax.f32 %v1056_v40, %v1057_v41  ;;  %v2190_v47 = vld [vmem:[#allocation30_spill] sm:$0xff] }
 0x213   :  { %v1065_v39 = vmax.f32 %v1063_v33, %v1064_v29  ;;  %v1072_v20 = vmax.f32 %v1070_v25, %v1071_v30  ;;  %v1079_v2 = vmax.f32 %v1077_v27, %v1078_v19  ;;  %v1086_v8 = vmax.f32 %v1084_v38, %v1085_v54  ;;  %v2191_v33 = vld [vmem:[#allocation29_spill] sm:$0xff]  ;;  %v2192_v27 = vld [vmem:[#allocation32_spill] sm:$0xff] }
 0x214   :  { %v1093_v53 = vmax.f32 %v1091_v18, %v1092_v56  ;;  %v1045_v36 = vrot.slane %v1044_v28, 1  ;;  %v1052_v49 = vrot.slane %v1051_v32, 1  ;;  %v1059_v35 = vrot.slane %v1058_v31, 1 }
 0x215   :  { %v1066_v42 = vrot.slane %v1065_v39, 1  ;;  %v1073_v43 = vrot.slane %v1072_v20, 1  ;;  %v1080_v44 = vrot.slane %v1079_v2, 1  ;;  %v1087_v55 = vrot.slane %v1086_v8, 1 }
 0x216   :  { %v1094_v50 = vrot.slane %v1093_v53, 1  ;;  %v1949_v45 = vmax.f32 %v1044_v28, %v1045_v36  ;;  %v1951_v52 = vmax.f32 %v1051_v32, %v1052_v49  ;;  %v1953_v6 = vmax.f32 %v1058_v31, %v1059_v35 }
 0x217   :  { %v1955_v58 = vmax.f32 %v1065_v39, %v1066_v42  ;;  %v1957_v62 = vmax.f32 %v1072_v20, %v1073_v43  ;;  %v1959_v5 = vmax.f32 %v1079_v2, %v1080_v44  ;;  %v1961_v60 = vmax.f32 %v1086_v8, %v1087_v55 }
 0x218   :  { %v1963_v0 = vmax.f32 %v1093_v53, %v1094_v50  ;;  %v1096_v7 = vmax.f32 %v1664_v10, %v1672_v14  ;;  %v1103_v59 = vmax.f32 %v1668_v12, %v1676_v16  ;;  %v1110_v63 = vmax.f32 %v1666_v11, %v1674_v15  ;;  %v2193_v10 = vld [vmem:[#allocation31_spill] sm:$0xff] }
 0x219   :  { %v1117_v34 = vmax.f32 %v1670_v13, %v1678_v17  ;;  %v1124_v1 = vmax.f32 %v2189_v61, %v1688_v22  ;;  %v1131_v40 = vmax.f32 %v2190_v47, %v1692_v24  ;;  %v1138_v25 = vmax.f32 %v2191_v33, %v1690_v23 }
 0x21a   :  { %v1145_v14 = vmax.f32 %v2193_v10, %v2192_v27  ;;  %v1097_v38 = vrot.slane %v1096_v7, 4  ;;  %v1104_v12 = vrot.slane %v1103_v59, 4  ;;  %v1111_v16 = vrot.slane %v1110_v63, 4 }
 0x21b   :  { %v1118_v18 = vrot.slane %v1117_v34, 4  ;;  %v1125_v11 = vrot.slane %v1124_v1, 4  ;;  %v1132_v15 = vrot.slane %v1131_v40, 4  ;;  %v1139_v57 = vrot.slane %v1138_v25, 4 }
 0x21c   :  { %v1146_v13 = vrot.slane %v1145_v14, 4  ;;  %v1098_v17 = vmax.f32 %v1096_v7, %v1097_v38  ;;  %v1105_v37 = vmax.f32 %v1103_v59, %v1104_v12  ;;  %v1112_v22 = vmax.f32 %v1110_v63, %v1111_v16  ;;  %v2194_v38 = vld [vmem:[#allocation37_spill] sm:$0xff] }
 0x21d   :  { %v1119_v41 = vmax.f32 %v1117_v34, %v1118_v18  ;;  %v1126_v29 = vmax.f32 %v1124_v1, %v1125_v11  ;;  %v1133_v24 = vmax.f32 %v1131_v40, %v1132_v15  ;;  %v1140_v30 = vmax.f32 %v1138_v25, %v1139_v57  ;;  %v2195_v12 = vld [vmem:[#allocation33_spill] sm:$0xff]  ;;  %v2196_v18 = vld [vmem:[#allocation39_spill] sm:$0xff]  ;;  %v2198_v57 = vld [vmem:[#allocation38_spill] sm:$0xff] }
 0x21e   :  { %v1147_v19 = vmax.f32 %v1145_v14, %v1146_v13  ;;  %v1099_v23 = vrot.slane %v1098_v17, 2  ;;  %v1106_v54 = vrot.slane %v1105_v37, 2  ;;  %v1113_v56 = vrot.slane %v1112_v22, 2  ;;  %v2197_v11 = vld [vmem:[#allocation35_spill] sm:$0xff]  ;;  %v2199_v13 = vld [vmem:[#allocation34_spill] sm:$0xff] }
 0x21f   :  { %v1120_v28 = vrot.slane %v1119_v41, 2  ;;  %v1127_v32 = vrot.slane %v1126_v29, 2  ;;  %v1134_v31 = vrot.slane %v1133_v24, 2  ;;  %v1141_v39 = vrot.slane %v1140_v30, 2 }
 0x220   :  { %v1148_v20 = vrot.slane %v1147_v19, 2  ;;  %v1100_v2 = vmax.f32 %v1098_v17, %v1099_v23  ;;  %v1107_v8 = vmax.f32 %v1105_v37, %v1106_v54  ;;  %v1114_v53 = vmax.f32 %v1112_v22, %v1113_v56  ;;  %v2200_v37 = vld [vmem:[#allocation40_spill] sm:$0xff]  ;;  %v2205_v23 = vld [vmem:[#allocation43_spill] sm:$0xff]  ;;  %v2206_v56 = vld [vmem:[#allocation46_spill] sm:$0xff] }
 0x221   :  { %v1121_v36 = vmax.f32 %v1119_v41, %v1120_v28  ;;  %v1128_v49 = vmax.f32 %v1126_v29, %v1127_v32  ;;  %v1135_v35 = vmax.f32 %v1133_v24, %v1134_v31  ;;  %v1142_v42 = vmax.f32 %v1140_v30, %v1141_v39  ;;  %v2201_v22 = vld [vmem:[#allocation36_spill] sm:$0xff]  ;;  %v2202_v29 = vld [vmem:[#allocation45_spill] sm:$0xff]  ;;  %v2207_v28 = vld [vmem:[#allocation42_spill] sm:$0xff] }
 0x222   :  { %v1149_v43 = vmax.f32 %v1147_v19, %v1148_v20  ;;  %v1101_v44 = vrot.slane %v1100_v2, 1  ;;  %v1108_v55 = vrot.slane %v1107_v8, 1  ;;  %v1115_v50 = vrot.slane %v1114_v53, 1  ;;  %v2203_v24 = vld [vmem:[#allocation41_spill] sm:$0xff]  ;;  %v2204_v19 = vld [vmem:[#allocation47_spill] sm:$0xff]  ;;  %v2208_v31 = vld [vmem:[#allocation48_spill] sm:$0xff] }
 0x223   :  { %v1122_v7 = vrot.slane %v1121_v36, 1  ;;  %v1129_v59 = vrot.slane %v1128_v49, 1  ;;  %v1136_v63 = vrot.slane %v1135_v35, 1  ;;  %v1143_v34 = vrot.slane %v1142_v42, 1  ;;  %v2209_v39 = vld [vmem:[#allocation44_spill] sm:$0xff] }
 0x224   :  { %v1150_v61 = vrot.slane %v1149_v43, 1  ;;  %v1981_v1 = vmax.f32 %v1100_v2, %v1101_v44  ;;  %v1983_v47 = vmax.f32 %v1107_v8, %v1108_v55  ;;  %v1985_v40 = vmax.f32 %v1114_v53, %v1115_v50 }
 0x225   :  { %v1987_v33 = vmax.f32 %v1121_v36, %v1122_v7  ;;  %v1989_v25 = vmax.f32 %v1128_v49, %v1129_v59  ;;  %v1991_v27 = vmax.f32 %v1135_v35, %v1136_v63  ;;  %v1993_v10 = vmax.f32 %v1142_v42, %v1143_v34 }
 0x226   :  { %v1995_v14 = vmax.f32 %v1149_v43, %v1150_v61  ;;  %v1152_v16 = vmax.f32 %v2195_v12, %v2194_v38  ;;  %v1159_v15 = vmax.f32 %v2197_v11, %v2196_v18  ;;  %v1166_v17 = vmax.f32 %v2199_v13, %v2198_v57 }
 0x227   :  { %v1173_v41 = vmax.f32 %v2201_v22, %v2200_v37  ;;  %v1180_v30 = vmax.f32 %v2203_v24, %v2202_v29  ;;  %v1187_v54 = vmax.f32 %v2205_v23, %v2204_v19  ;;  %v1194_v32 = vmax.f32 %v2207_v28, %v2206_v56 }
 0x228   :  { %v1201_v20 = vmax.f32 %v2209_v39, %v2208_v31  ;;  %v1153_v2 = vrot.slane %v1152_v16, 4  ;;  %v1160_v8 = vrot.slane %v1159_v15, 4  ;;  %v1167_v53 = vrot.slane %v1166_v17, 4 }
 0x229   :  { %v1174_v36 = vrot.slane %v1173_v41, 4  ;;  %v1181_v49 = vrot.slane %v1180_v30, 4  ;;  %v1188_v35 = vrot.slane %v1187_v54, 4  ;;  %v1195_v42 = vrot.slane %v1194_v32, 4 }
 0x22a   :  { %v1202_v43 = vrot.slane %v1201_v20, 4  ;;  %v1154_v44 = vmax.f32 %v1152_v16, %v1153_v2  ;;  %v1161_v55 = vmax.f32 %v1159_v15, %v1160_v8  ;;  %v1168_v50 = vmax.f32 %v1166_v17, %v1167_v53 }
 0x22b   :  { %v1175_v7 = vmax.f32 %v1173_v41, %v1174_v36  ;;  %v1182_v59 = vmax.f32 %v1180_v30, %v1181_v49  ;;  %v1189_v63 = vmax.f32 %v1187_v54, %v1188_v35  ;;  %v1196_v34 = vmax.f32 %v1194_v32, %v1195_v42 }
 0x22c   :  { %v1203_v61 = vmax.f32 %v1201_v20, %v1202_v43  ;;  %v1155_v38 = vrot.slane %v1154_v44, 2  ;;  %v1162_v12 = vrot.slane %v1161_v55, 2  ;;  %v1169_v18 = vrot.slane %v1168_v50, 2 }
 0x22d   :  { %v1176_v11 = vrot.slane %v1175_v7, 2  ;;  %v1183_v57 = vrot.slane %v1182_v59, 2  ;;  %v1190_v13 = vrot.slane %v1189_v63, 2  ;;  %v1197_v37 = vrot.slane %v1196_v34, 2 }
 0x22e   :  { %v1204_v22 = vrot.slane %v1203_v61, 2  ;;  %v1156_v29 = vmax.f32 %v1154_v44, %v1155_v38  ;;  %v1163_v24 = vmax.f32 %v1161_v55, %v1162_v12  ;;  %v1170_v19 = vmax.f32 %v1168_v50, %v1169_v18 }
 0x22f   :  { %v1177_v23 = vmax.f32 %v1175_v7, %v1176_v11  ;;  %v1184_v16 = vmax.f32 %v1182_v59, %v1183_v57  ;;  %v1191_v15 = vmax.f32 %v1189_v63, %v1190_v13  ;;  %v1198_v17 = vmax.f32 %v1196_v34, %v1197_v37 }
 0x230   :  { %v1205_v41 = vmax.f32 %v1203_v61, %v1204_v22  ;;  %v1157_v30 = vrot.slane %v1156_v29, 1  ;;  %v1164_v54 = vrot.slane %v1163_v24, 1  ;;  %v1171_v56 = vrot.slane %v1170_v19, 1 }
 0x231   :  { %v1178_v28 = vrot.slane %v1177_v23, 1  ;;  %v1185_v32 = vrot.slane %v1184_v16, 1  ;;  %v1192_v31 = vrot.slane %v1191_v15, 1  ;;  %v1199_v39 = vrot.slane %v1198_v17, 1 }
 0x232   :  { %v1206_v20 = vrot.slane %v1205_v41, 1  ;;  %v1158_v2 = vmax.f32 %v1156_v29, %v1157_v30  ;;  %v1165_v8 = vmax.f32 %v1163_v24, %v1164_v54  ;;  %v1172_v53 = vmax.f32 %v1170_v19, %v1171_v56 }
 0x233   :  { %v1179_v36 = vmax.f32 %v1177_v23, %v1178_v28  ;;  %v1186_v49 = vmax.f32 %v1184_v16, %v1185_v32  ;;  %v1193_v35 = vmax.f32 %v1191_v15, %v1192_v31  ;;  %v1200_v42 = vmax.f32 %v1198_v17, %v1199_v39 }
 0x234   :  { %v1207_v43 = vmax.f32 %v1205_v41, %v1206_v20  ;;  %v1241_v44 = vsel %vm1240_vm7, %v1925_v9, %v1917_v51  ;;  %v1254_v50 = vsel %vm1240_vm7, %v1927_v26, %v1919_v46  ;;  %v1261_v7 = vsel %vm1240_vm7, %v1929_v4, %v1921_v48  ;;  %v980_v26 = vld [vmem:[#allocation2 + $0x10] sm:$0xff] }
 0x235   :  { %v1243_v55 = vsel %vm1242_vm8, %v1949_v45, %v1241_v44  ;;  %v1268_v59 = vsel %vm1240_vm7, %v1931_v3, %v1923_v21  ;;  %v1255_v34 = vsel %vm1242_vm8, %v1951_v52, %v1254_v50  ;;  %v1262_v51 = vsel %vm1242_vm8, %v1953_v6, %v1261_v7 }
 0x236   :  { %v1245_v63 = vsel %vm1244_vm9, %v1957_v62, %v1243_v55  ;;  %v1269_v9 = vsel %vm1242_vm8, %v1955_v58, %v1268_v59  ;;  %v1256_v46 = vsel %vm1244_vm9, %v1959_v5, %v1255_v34  ;;  %v1263_v48 = vsel %vm1244_vm9, %v1961_v60, %v1262_v51  ;;  %v981_v58 = vld [vmem:[#allocation2] sm:$0xff]  ;;  %v982_v62 = vld [vmem:[#allocation2 + $0x18] sm:$0xff]  ;;  %v983_v5 = vld [vmem:[#allocation2 + $0x8] sm:$0xff] }
 0x237   :  { %v1247_v45 = vsel %vm1246_vm10, %v1981_v1, %v1245_v63  ;;  %v1270_v21 = vsel %vm1244_vm9, %v1963_v0, %v1269_v9  ;;  %v1257_v3 = vsel %vm1246_vm10, %v1983_v47, %v1256_v46  ;;  %v1264_v52 = vsel %vm1246_vm10, %v1985_v40, %v1263_v48 }
 0x238   :  { %v1249_v4 = vsel %vm1248_vm11, %v1989_v25, %v1247_v45  ;;  %v1271_v6 = vsel %vm1246_vm10, %v1987_v33, %v1270_v21  ;;  %v1258_v0 = vsel %vm1248_vm11, %v1991_v27, %v1257_v3  ;;  %v1265_v1 = vsel %vm1248_vm11, %v1993_v10, %v1264_v52 }
 0x239   :  { %v1251_v60 = vsel %vm1250_vm12, %v1158_v2, %v1249_v4  ;;  %v1272_v47 = vsel %vm1248_vm11, %v1995_v14, %v1271_v6  ;;  %v1259_v40 = vsel %vm1250_vm12, %v1165_v8, %v1258_v0  ;;  %v1266_v33 = vsel %vm1250_vm12, %v1172_v53, %v1265_v1 }
 0x23a   :  { %v1253_v25 = vsel %vm1252_vm13, %v1186_v49, %v1251_v60  ;;  %v1273_v61 = vsel %vm1250_vm12, %v1179_v36, %v1272_v47  ;;  %v1260_v38 = vsel %vm1252_vm13, %v1193_v35, %v1259_v40  ;;  %v1267_v12 = vsel %vm1252_vm13, %v1200_v42, %v1266_v33 }
 0x23b   :  { %v1274_v27 = vsel %vm1252_vm13, %v1207_v43, %v1273_v61  ;;  %v1279_v18 = vmax.f32 %v980_v26, %v1253_v25  ;;  %v1280_v11 = vmax.f32 %v981_v58, %v1260_v38  ;;  %v1281_v10 = vmax.f32 %v982_v62, %v1267_v12 }
 0x23c   :  { %v1282_v57 = vmax.f32 %v983_v5, %v1274_v27 }
 0x23d   :  { %1283 = vst [vmem:[#allocation2 + $0x10] sm:$0xff] %v1279_v18  ;;  %1284 = vst [vmem:[#allocation2] sm:$0xff] %v1280_v11 }
 0x23e   :  { %1285 = vst [vmem:[#allocation2 + $0x18] sm:$0xff] %v1281_v10  ;;  %1286 = vst [vmem:[#allocation2 + $0x8] sm:$0xff] %v1282_v57 }
 0x23f PF:  { %v1296_v14 = vlaneseq  ;;  %v1294_v37 = vld [vmem:[%s2075_s4] sm:$0xf] }
 0x241   :  { %v1297_v13 = vshrl.u32 %v1296_v14, 7 }
 0x243   :  { %v1298_v29 = vsub.s32 0, %v1297_v13  ;;  %v1302_v24 = vsub.s32 1, %v1297_v13  ;;  %v1306_v19 = vsub.s32 2, %v1297_v13  ;;  %v1310_v23 = vsub.s32 3, %v1297_v13 }
 0x244   :  { %v1290_v22 = vld [vmem:[#allocation2 + $0x10] sm:$0xff]  ;;  %v1291_v16 = vld [vmem:[#allocation2] sm:$0xff] }
 0x245   :  { %v1292_v15 = vld [vmem:[#allocation2 + $0x18] sm:$0xff]  ;;  %v1293_v17 = vld [vmem:[#allocation2 + $0x8] sm:$0xff]  ;;  %v1299_v41 = vrot.slane %v1294_v37, %v1298_v29  ;;  %v1303_v30 = vrot.slane %v1294_v37, %v1302_v24  ;;  %v1307_v54 = vrot.slane %v1294_v37, %v1306_v19  ;;  %v1311_v56 = vrot.slane %v1294_v37, %v1310_v23 }
 0x247   :  { %v1316_v28 = vadd.f32 %v1299_v41, %v1290_v22  ;;  %v1317_v32 = vadd.f32 %v1303_v30, %v1291_v16  ;;  %v1318_v31 = vadd.f32 %v1307_v54, %v1292_v15  ;;  %v1319_v39 = vadd.f32 %v1311_v56, %v1293_v17 }
 0x249   :  { %v1320_v20 = vmax.f32 %v1316_v28, 0.0  ;;  %v1321_v2 = vmax.f32 %v1317_v32, 0.0  ;;  %v1322_v8 = vmax.f32 %v1318_v31, 0.0  ;;  %v1323_v53 = vmax.f32 %v1319_v39, 0.0 }
 0x24b   :  { %1324 = vst [vmem:[%s2076_s5] sm:$0xff] %v1320_v20  ;;  %1325 = vst [vmem:[%s2076_s5 + $0x8] sm:$0xff] %v1321_v2 }
 0x24c   :  { %1326 = vst [vmem:[%s2076_s5 + $0x10] sm:$0xff] %v1322_v8  ;;  %1327 = vst [vmem:[%s2076_s5 + $0x18] sm:$0xff] %v1323_v53 }

</bundles_post_ra>
